<compile_context>
chip_gen: v7x
topology: tpu7x:2x2x1
jax: 0.10.0
libtpu: 0.0.40
codegen_flags: <defaults>
</compile_context>

<pallas_src>
import jax
import jax.numpy as jnp
from jax import lax
from jax.experimental import pallas as pl
from jax.experimental.pallas import tpu as pltpu

START_TOKEN_INDEX = 0  # deterministic stand-in for token_to_id['<start>']


def _round_up(x, m):
    return (x + m - 1) // m * m


def _decoder_kernel(w_fused_ref, ctx_gates_ref, wo_ref, bo_ref, out_ref,
                    h_scr, c_scr, oh_scr):
    """One time-chunk (Tc steps) of the greedy LSTM decode per grid step."""
    Tc, Bp, Vp = out_ref.shape
    Hp = wo_ref.shape[0]
    g = pl.program_id(0)

    iota_v = lax.broadcasted_iota(jnp.int32, (Bp, Vp), 1)
    start_onehot = (iota_v == START_TOKEN_INDEX).astype(jnp.float32)

    # Initialize the recurrent state once (first grid step).
    @pl.when(g == 0)
    def _():
        h_scr[...] = jnp.zeros_like(h_scr)
        c_scr[...] = jnp.zeros_like(c_scr)
        oh_scr[...] = start_onehot.astype(jnp.bfloat16)

    # Loop-invariant loads / broadcasts hoisted out of the unrolled step body.
    w_fused = w_fused_ref[...]                       # (Vp+Hp, 4Hp) bf16
    wo = wo_ref[...]                                 # (Hp, Vp)     bf16
    ctx_gates = ctx_gates_ref[...]                   # (Bp, 4Hp)    f32
    bo_b = jnp.broadcast_to(bo_ref[...], (Bp, Vp))   # (Bp, Vp)     f32

    # Recurrent carry (persists across grid steps via VMEM scratch).
    h = h_scr[...]                                   # (Bp, Hp) f32
    c = c_scr[...]                                   # (Bp, Hp) f32
    one_hot = oh_scr[...]                            # (Bp, Vp) bf16

    for j in range(Tc):  # static partial unroll: Tc steps per grid iteration
        # Single fused gate matmul: [one_hot | h] @ [Emb@Wx ; Wh]  (f32 acc).
        xh = jnp.concatenate([one_hot, h.astype(jnp.bfloat16)], axis=-1)
        gates = jnp.dot(xh, w_fused,
                        preferred_element_type=jnp.float32) + ctx_gates  # (Bp, 4Hp)

        # PyTorch LSTM gate order [i, f, g, o]; each slice lane-aligned (Hp%128==0).
        i_g = jax.nn.sigmoid(gates[:, 0 * Hp:1 * Hp])
        f_g = jax.nn.sigmoid(gates[:, 1 * Hp:2 * Hp])
        g_g = jnp.tanh(gates[:, 2 * Hp:3 * Hp])
        o_g = jax.nn.sigmoid(gates[:, 3 * Hp:4 * Hp])

        c_new = f_g * c + i_g * g_g
        h_new = o_g * jnp.tanh(c_new)

        logits = (jnp.dot(h_new.astype(jnp.bfloat16), wo,
                          preferred_element_type=jnp.float32) + bo_b)    # (Bp, Vp)

        # Greedy argmax (first-max tie-break) -> next one-hot, while logits are
        # live in vregs (no (Bp, Vp) logits carried across steps).
        m = jnp.max(logits, axis=-1, keepdims=True)
        idx = jnp.min(jnp.where(logits == m, iota_v, Vp), axis=-1, keepdims=True)
        next_onehot = (iota_v == idx).astype(jnp.bfloat16)

        if j == 0:
            # Global t == 0 only occurs at (g == 0, j == 0): emit the <start>
            # one-hot and keep the initial state; otherwise a normal step.
            is_start = g == 0
            row = jnp.where(is_start, start_onehot, logits)
            h = jnp.where(is_start, h, h_new)
            c = jnp.where(is_start, c, c_new)
            one_hot = jnp.where(is_start, one_hot, next_onehot)
        else:
            row = logits
            h, c, one_hot = h_new, c_new, next_onehot

        out_ref[pl.ds(j, 1), :, :] = row[None]       # full-tile, lane-dense store

    # Persist carry for the next time chunk.
    h_scr[...] = h
    c_scr[...] = c
    oh_scr[...] = one_hot


def decoder_forward(context_vector, params, max_seq_length, *, time_chunk=4):
    context_vector = jnp.asarray(context_vector, jnp.float32)
    B, C = context_vector.shape
    emb = jnp.asarray(params["embedding"], jnp.float32)       # (V, E)
    V, E = emb.shape
    w_ih = jnp.asarray(params["w_ih"], jnp.float32)           # (4H, E+C)
    w_hh = jnp.asarray(params["w_hh"], jnp.float32)           # (4H, H)
    H = w_hh.shape[1]

    Hp = _round_up(H, 128)
    Vp = _round_up(V, 128)
    Bp = _round_up(max(B, 8), 8)
    T = int(max_seq_length)
    Tc = max(1, min(int(time_chunk), T))
    Tp = _round_up(T, Tc)
    n_chunks = Tp // Tc

    # Split / transpose to row-major matmul layouts (gate order [i, f, g, o]).
    wx = w_ih[:, :E].T                                        # (E, 4H)
    wc = w_ih[:, E:].T                                        # (C, 4H)
    wh = w_hh.T                                               # (H, 4H)
    b = params["b_ih"] + params["b_hh"]                       # (4H,)
    wo = params["w_out"].T                                    # (H, V)
    bo = params["b_out"]                                      # (V,)

    def pad_gates(w):
        # (..., 4H) -> (..., 4*Hp): zero-pad each per-gate H-block to Hp lanes.
        lead = w.shape[:-1]
        w4 = w.reshape(lead + (4, H))
        w4 = jnp.pad(w4, [(0, 0)] * (w4.ndim - 1) + [(0, Hp - H)])
        return w4.reshape(lead + (4 * Hp,))

    wx_p = pad_gates(wx)                                            # (E, 4Hp)
    wc_p = pad_gates(wc)                                            # (C, 4Hp)
    wh_p = jnp.pad(pad_gates(wh), ((0, Hp - H), (0, 0)))            # (Hp, 4Hp)
    b_p = pad_gates(b)                                              # (4Hp,)

    # Fold embedding through the input weight, then stack with Wh so the kernel
    # does a single fused gate matmul: [one_hot | h] @ [Emb@Wx ; Wh].
    emb_gates = jnp.pad(jnp.dot(emb, wx_p), ((0, Vp - V), (0, 0)))  # (Vp, 4Hp)
    w_fused = jnp.concatenate([emb_gates, wh_p], axis=0).astype(jnp.bfloat16)

    # Batch padded to 8 sublanes; padded rows are inert and sliced off below.
    ctx_p = jnp.pad(context_vector, ((0, Bp - B), (0, 0)))
    ctx_gates = (jnp.dot(ctx_p, wc_p) + b_p[None, :]).astype(jnp.float32)  # (Bp, 4Hp)

    wo_p = jnp.pad(wo, ((0, Hp - H), (0, Vp - V))).astype(jnp.bfloat16)    # (Hp, Vp)
    # Padded vocab logits pinned to -1e30 so greedy argmax never selects them.
    bo_p = jnp.full((Vp,), -1e30, jnp.float32).at[:V].set(
        jnp.asarray(bo, jnp.float32))[None, :]                             # (1, Vp)

    out_tbv = pl.pallas_call(
        _decoder_kernel,
        out_shape=jax.ShapeDtypeStruct((Tp, Bp, Vp), jnp.float32),
        grid=(n_chunks,),
        in_specs=[
            pl.BlockSpec((Vp + Hp, 4 * Hp), lambda g: (0, 0)),  # fused [Emb@Wx ; Wh] bf16
            pl.BlockSpec((Bp, 4 * Hp), lambda g: (0, 0)),       # ctx@Wc + b  f32
            pl.BlockSpec((Hp, Vp), lambda g: (0, 0)),           # Wout        bf16
            pl.BlockSpec((1, Vp), lambda g: (0, 0)),            # bout        f32
        ],
        out_specs=pl.BlockSpec((Tc, Bp, Vp), lambda g: (g, 0, 0)),
        scratch_shapes=[
            pltpu.VMEM((Bp, Hp), jnp.float32),                  # h carry
            pltpu.VMEM((Bp, Hp), jnp.float32),                  # c carry
            pltpu.VMEM((Bp, Vp), jnp.bfloat16),                 # one-hot carry
        ],
        compiler_params=pltpu.CompilerParams(
            dimension_semantics=("arbitrary",),                 # serial recurrence
            vmem_limit_bytes=48 * 1024 * 1024,                  # v7x-safe headroom
        ),
    )(w_fused, ctx_gates, wo_p, bo_p)

    # (Tp, Bp, Vp) -> drop padding -> (B, T, 1, V) == torch.stack(outputs, dim=1)
    return jnp.transpose(out_tbv[:T, :B, :V], (1, 0, 2))[:, :, None, :]


if __name__ == "__main__":
    key = jax.random.PRNGKey(0)
    B, C, E, H, V, T = 2, 4, 8, 32, 16, 8   # batch, context, embed, hidden, vocab, max_seq_length
    ks = jax.random.split(key, 8)

    context = jax.random.normal(ks[0], (B, C), dtype=jnp.float32)
    params = {
        "embedding": 0.1 * jax.random.normal(ks[1], (V, E), dtype=jnp.float32),
        "w_ih":      0.1 * jax.random.normal(ks[2], (4 * H, E + C), dtype=jnp.float32),
        "w_hh":      0.1 * jax.random.normal(ks[3], (4 * H, H), dtype=jnp.float32),
        "b_ih":      0.1 * jax.random.normal(ks[4], (4 * H,), dtype=jnp.float32),
        "b_hh":      0.1 * jax.random.normal(ks[5], (4 * H,), dtype=jnp.float32),
        "w_out":     0.1 * jax.random.normal(ks[6], (V, H), dtype=jnp.float32),
        "b_out":     0.1 * jax.random.normal(ks[7], (V,), dtype=jnp.float32),
    }

    out = decoder_forward(context, params, T, time_chunk=4)
    out = jax.block_until_ready(out)
    assert out.shape == (B, T, 1, V), out.shape
    assert bool(jnp.all(jnp.isfinite(out)))
    print("KERNEL_OK")
</pallas_src>

<mosaic_0001>
module attributes {stable_mosaic.version = 11 : i64} {
  func.func @_decoder_kernel(%arg0: i32, %arg1: memref<256x512xbf16, #tpu.memory_space<vmem>>, %arg2: memref<8x512xf32, #tpu.memory_space<vmem>>, %arg3: memref<128x128xbf16, #tpu.memory_space<vmem>>, %arg4: memref<1x128xf32, #tpu.memory_space<vmem>>, %arg5: memref<4x8x128xf32, #tpu.memory_space<vmem>>, %arg6: memref<8x128xf32, #tpu.memory_space<vmem>>, %arg7: memref<8x128xf32, #tpu.memory_space<vmem>>, %arg8: memref<8x128xbf16, #tpu.memory_space<vmem>>) attributes {dimension_semantics = [#tpu.dimension_semantics<arbitrary>], iteration_bounds = array<i64: 2>, scalar_prefetch = 0 : i64, scratch_operands = 3 : i64, tpu.core_type = #tpu.core_type<tc>, window_params = [{pipeline_mode = #tpu.pipeline_mode<synchronous>, transform_indices = @transform_0, window_bounds = array<i64: 256, 512>}, {pipeline_mode = #tpu.pipeline_mode<synchronous>, transform_indices = @transform_1, window_bounds = array<i64: 8, 512>}, {pipeline_mode = #tpu.pipeline_mode<synchronous>, transform_indices = @transform_2, window_bounds = array<i64: 128, 128>}, {pipeline_mode = #tpu.pipeline_mode<synchronous>, transform_indices = @transform_3, window_bounds = array<i64: 1, 128>}, {transform_indices = @transform_4, window_bounds = array<i64: 4, 8, 128>}]} {
    %0 = tpu.iota {dimensions = array<i32: 1>} : vector<8x128xi32>
    %c0_i32 = arith.constant 0 : i32
    %1 = vector.broadcast %c0_i32 : i32 to vector<8x128xi32>
    %2 = arith.cmpi eq, %0, %1 : vector<8x128xi32>
    %3 = arith.extui %2 : vector<8x128xi1> to vector<8x128xi32>
    %4 = arith.sitofp %3 : vector<8x128xi32> to vector<8x128xf32>
    %c0_i32_0 = arith.constant 0 : i32
    %5 = arith.cmpi eq, %arg0, %c0_i32_0 : i32
    %6 = arith.extui %5 : i1 to i32
    %c0_i32_1 = arith.constant 0 : i32
    %7 = arith.cmpi ne, %6, %c0_i32_1 : i32
    scf.if %7 {
      %cst_61 = arith.constant 0.000000e+00 : f32
      %213 = vector.broadcast %cst_61 : f32 to vector<8x128xf32>
      %c0_62 = arith.constant 0 : index
      %c0_63 = arith.constant 0 : index
      %214 = vector.load %arg6[%c0_62, %c0_63] : memref<8x128xf32, #tpu.memory_space<vmem>>, vector<8x128xf32>
      tpu.vector_store %arg6[%c0_62, %c0_63], %213 {strides = array<i32>} : memref<8x128xf32, #tpu.memory_space<vmem>>, vector<8x128xf32>,
      %cst_64 = arith.constant 0.000000e+00 : f32
      %215 = vector.broadcast %cst_64 : f32 to vector<8x128xf32>
      %c0_65 = arith.constant 0 : index
      %c0_66 = arith.constant 0 : index
      %216 = vector.load %arg7[%c0_65, %c0_66] : memref<8x128xf32, #tpu.memory_space<vmem>>, vector<8x128xf32>
      tpu.vector_store %arg7[%c0_65, %c0_66], %215 {strides = array<i32>} : memref<8x128xf32, #tpu.memory_space<vmem>>, vector<8x128xf32>,
      %217 = arith.truncf %4 : vector<8x128xf32> to vector<8x128xbf16>
      %c0_67 = arith.constant 0 : index
      %c0_68 = arith.constant 0 : index
      %218 = vector.load %arg8[%c0_67, %c0_68] : memref<8x128xbf16, #tpu.memory_space<vmem>>, vector<8x128xbf16>
      tpu.vector_store %arg8[%c0_67, %c0_68], %217 {strides = array<i32>} : memref<8x128xbf16, #tpu.memory_space<vmem>>, vector<8x128xbf16>,
    } else {
    }
    %c0 = arith.constant 0 : index
    %c0_2 = arith.constant 0 : index
    %8 = vector.load %arg1[%c0, %c0_2] : memref<256x512xbf16, #tpu.memory_space<vmem>>, vector<256x512xbf16>
    %c0_3 = arith.constant 0 : index
    %c0_4 = arith.constant 0 : index
    %9 = vector.load %arg3[%c0_3, %c0_4] : memref<128x128xbf16, #tpu.memory_space<vmem>>, vector<128x128xbf16>
    %c0_5 = arith.constant 0 : index
    %c0_6 = arith.constant 0 : index
    %10 = vector.load %arg2[%c0_5, %c0_6] : memref<8x512xf32, #tpu.memory_space<vmem>>, vector<8x512xf32>
    %c0_7 = arith.constant 0 : index
    %c0_8 = arith.constant 0 : index
    %11 = vector.load %arg4[%c0_7, %c0_8] : memref<1x128xf32, #tpu.memory_space<vmem>>, vector<1x128xf32>
    %12 = vector.shape_cast %11 : vector<1x128xf32> to vector<1x128xf32>
    %13 = vector.broadcast %12 : vector<1x128xf32> to vector<8x128xf32>
    %c0_9 = arith.constant 0 : index
    %c0_10 = arith.constant 0 : index
    %14 = vector.load %arg6[%c0_9, %c0_10] : memref<8x128xf32, #tpu.memory_space<vmem>>, vector<8x128xf32>
    %c0_11 = arith.constant 0 : index
    %c0_12 = arith.constant 0 : index
    %15 = vector.load %arg7[%c0_11, %c0_12] : memref<8x128xf32, #tpu.memory_space<vmem>>, vector<8x128xf32>
    %c0_13 = arith.constant 0 : index
    %c0_14 = arith.constant 0 : index
    %16 = vector.load %arg8[%c0_13, %c0_14] : memref<8x128xbf16, #tpu.memory_space<vmem>>, vector<8x128xbf16>
    %17 = arith.truncf %14 : vector<8x128xf32> to vector<8x128xbf16>
    %18 = tpu.concatenate %16, %17 in 1 : vector<8x128xbf16>, vector<8x128xbf16> -> vector<8x256xbf16>
    %cst = arith.constant dense<0.000000e+00> : vector<8x512xf32>
    %19 = tpu.matmul %18, %8, %cst {dimension_numbers = #tpu.dot_dimension_numbers<[1], [0], [0], [1], [0, 0, 1, 1], [], []>} : vector<8x256xbf16>, vector<256x512xbf16>, vector<8x512xf32> -> vector<8x512xf32>
    %20 = arith.addf %19, %10 : vector<8x512xf32>
    %21 = vector.extract_strided_slice %20 {offsets = [0, 0], sizes = [8, 128], strides = [1, 1]} : vector<8x512xf32> to vector<8x128xf32>
    %22 = arith.negf %21 : vector<8x128xf32>
    %23 = math.exp %22 : vector<8x128xf32>
    %cst_15 = arith.constant 1.000000e+00 : f32
    %24 = vector.broadcast %cst_15 : f32 to vector<8x128xf32>
    %25 = arith.addf %24, %23 : vector<8x128xf32>
    %26 = arith.divf %24, %25 : vector<8x128xf32>
    %27 = vector.extract_strided_slice %20 {offsets = [0, 128], sizes = [8, 128], strides = [1, 1]} : vector<8x512xf32> to vector<8x128xf32>
    %28 = arith.negf %27 : vector<8x128xf32>
    %29 = math.exp %28 : vector<8x128xf32>
    %cst_16 = arith.constant 1.000000e+00 : f32
    %30 = vector.broadcast %cst_16 : f32 to vector<8x128xf32>
    %31 = arith.addf %30, %29 : vector<8x128xf32>
    %32 = arith.divf %30, %31 : vector<8x128xf32>
    %33 = vector.extract_strided_slice %20 {offsets = [0, 256], sizes = [8, 128], strides = [1, 1]} : vector<8x512xf32> to vector<8x128xf32>
    %34 = math.tanh %33 : vector<8x128xf32>
    %35 = vector.extract_strided_slice %20 {offsets = [0, 384], sizes = [8, 128], strides = [1, 1]} : vector<8x512xf32> to vector<8x128xf32>
    %36 = arith.negf %35 : vector<8x128xf32>
    %37 = math.exp %36 : vector<8x128xf32>
    %cst_17 = arith.constant 1.000000e+00 : f32
    %38 = vector.broadcast %cst_17 : f32 to vector<8x128xf32>
    %39 = arith.addf %38, %37 : vector<8x128xf32>
    %40 = arith.divf %38, %39 : vector<8x128xf32>
    %41 = arith.mulf %32, %15 : vector<8x128xf32>
    %42 = arith.mulf %26, %34 : vector<8x128xf32>
    %43 = arith.addf %41, %42 : vector<8x128xf32>
    %44 = math.tanh %43 : vector<8x128xf32>
    %45 = arith.mulf %40, %44 : vector<8x128xf32>
    %46 = arith.truncf %45 : vector<8x128xf32> to vector<8x128xbf16>
    %cst_18 = arith.constant dense<0.000000e+00> : vector<8x128xf32>
    %47 = tpu.matmul %46, %9, %cst_18 {dimension_numbers = #tpu.dot_dimension_numbers<[1], [0], [0], [1], [0, 0, 1, 1], [], []>} : vector<8x128xbf16>, vector<128x128xbf16>, vector<8x128xf32> -> vector<8x128xf32>
    %48 = arith.addf %47, %13 : vector<8x128xf32>
    %cst_19 = arith.constant dense<0xFF800000> : vector<8xf32>
    %49 = vector.multi_reduction <maximumf>, %48, %cst_19 [1] : vector<8x128xf32> to vector<8xf32>
    %50 = vector.shape_cast %49 : vector<8xf32> to vector<8x1xf32>
    %51 = vector.broadcast %50 : vector<8x1xf32> to vector<8x128xf32>
    %52 = arith.cmpf oeq, %48, %51 : vector<8x128xf32>
    %c128_i32 = arith.constant 128 : i32
    %53 = vector.broadcast %c128_i32 : i32 to vector<8x128xi32>
    %54 = arith.select %52, %0, %53 : vector<8x128xi1>, vector<8x128xi32>
    %cst_20 = arith.constant dense<2147483647> : vector<8xi32>
    %55 = vector.multi_reduction <minsi>, %54, %cst_20 [1] : vector<8x128xi32> to vector<8xi32>
    %56 = vector.shape_cast %55 : vector<8xi32> to vector<8x1xi32>
    %57 = vector.broadcast %56 : vector<8x1xi32> to vector<8x128xi32>
    %58 = arith.cmpi eq, %0, %57 : vector<8x128xi32>
    %59 = arith.extui %58 : vector<8x128xi1> to vector<8x128xi32>
    %60 = arith.sitofp %59 : vector<8x128xi32> to vector<8x128xf32>
    %61 = arith.truncf %60 : vector<8x128xf32> to vector<8x128xbf16>
    %c0_i32_21 = arith.constant 0 : i32
    %62 = arith.cmpi eq, %arg0, %c0_i32_21 : i32
    %63 = arith.select %62, %4, %48 : vector<8x128xf32>
    %64 = arith.select %62, %14, %45 : vector<8x128xf32>
    %65 = arith.select %62, %15, %43 : vector<8x128xf32>
    %66 = arith.select %62, %16, %61 : vector<8x128xbf16>
    %67 = vector.shape_cast %63 : vector<8x128xf32> to vector<1x8x128xf32>
    %c0_22 = arith.constant 0 : index
    %c0_23 = arith.constant 0 : index
    %c0_24 = arith.constant 0 : index
    %68 = vector.load %arg5[%c0_22, %c0_23, %c0_24] : memref<4x8x128xf32, #tpu.memory_space<vmem>>, vector<1x8x128xf32>
    tpu.vector_store %arg5[%c0_22, %c0_23, %c0_24], %67 {strides = array<i32>} : memref<4x8x128xf32, #tpu.memory_space<vmem>>, vector<1x8x128xf32>,
    %69 = arith.truncf %64 : vector<8x128xf32> to vector<8x128xbf16>
    %70 = tpu.concatenate %66, %69 in 1 : vector<8x128xbf16>, vector<8x128xbf16> -> vector<8x256xbf16>
    %cst_25 = arith.constant dense<0.000000e+00> : vector<8x512xf32>
    %71 = tpu.matmul %70, %8, %cst_25 {dimension_numbers = #tpu.dot_dimension_numbers<[1], [0], [0], [1], [0, 0, 1, 1], [], []>} : vector<8x256xbf16>, vector<256x512xbf16>, vector<8x512xf32> -> vector<8x512xf32>
    %72 = arith.addf %71, %10 : vector<8x512xf32>
    %73 = vector.extract_strided_slice %72 {offsets = [0, 0], sizes = [8, 128], strides = [1, 1]} : vector<8x512xf32> to vector<8x128xf32>
    %74 = arith.negf %73 : vector<8x128xf32>
    %75 = math.exp %74 : vector<8x128xf32>
    %cst_26 = arith.constant 1.000000e+00 : f32
    %76 = vector.broadcast %cst_26 : f32 to vector<8x128xf32>
    %77 = arith.addf %76, %75 : vector<8x128xf32>
    %78 = arith.divf %76, %77 : vector<8x128xf32>
    %79 = vector.extract_strided_slice %72 {offsets = [0, 128], sizes = [8, 128], strides = [1, 1]} : vector<8x512xf32> to vector<8x128xf32>
    %80 = arith.negf %79 : vector<8x128xf32>
    %81 = math.exp %80 : vector<8x128xf32>
    %cst_27 = arith.constant 1.000000e+00 : f32
    %82 = vector.broadcast %cst_27 : f32 to vector<8x128xf32>
    %83 = arith.addf %82, %81 : vector<8x128xf32>
    %84 = arith.divf %82, %83 : vector<8x128xf32>
    %85 = vector.extract_strided_slice %72 {offsets = [0, 256], sizes = [8, 128], strides = [1, 1]} : vector<8x512xf32> to vector<8x128xf32>
    %86 = math.tanh %85 : vector<8x128xf32>
    %87 = vector.extract_strided_slice %72 {offsets = [0, 384], sizes = [8, 128], strides = [1, 1]} : vector<8x512xf32> to vector<8x128xf32>
    %88 = arith.negf %87 : vector<8x128xf32>
    %89 = math.exp %88 : vector<8x128xf32>
    %cst_28 = arith.constant 1.000000e+00 : f32
    %90 = vector.broadcast %cst_28 : f32 to vector<8x128xf32>
    %91 = arith.addf %90, %89 : vector<8x128xf32>
    %92 = arith.divf %90, %91 : vector<8x128xf32>
    %93 = arith.mulf %84, %65 : vector<8x128xf32>
    %94 = arith.mulf %78, %86 : vector<8x128xf32>
    %95 = arith.addf %93, %94 : vector<8x128xf32>
    %96 = math.tanh %95 : vector<8x128xf32>
    %97 = arith.mulf %92, %96 : vector<8x128xf32>
    %98 = arith.truncf %97 : vector<8x128xf32> to vector<8x128xbf16>
    %cst_29 = arith.constant dense<0.000000e+00> : vector<8x128xf32>
    %99 = tpu.matmul %98, %9, %cst_29 {dimension_numbers = #tpu.dot_dimension_numbers<[1], [0], [0], [1], [0, 0, 1, 1], [], []>} : vector<8x128xbf16>, vector<128x128xbf16>, vector<8x128xf32> -> vector<8x128xf32>
    %100 = arith.addf %99, %13 : vector<8x128xf32>
    %cst_30 = arith.constant dense<0xFF800000> : vector<8xf32>
    %101 = vector.multi_reduction <maximumf>, %100, %cst_30 [1] : vector<8x128xf32> to vector<8xf32>
    %102 = vector.shape_cast %101 : vector<8xf32> to vector<8x1xf32>
    %103 = vector.broadcast %102 : vector<8x1xf32> to vector<8x128xf32>
    %104 = arith.cmpf oeq, %100, %103 : vector<8x128xf32>
    %c128_i32_31 = arith.constant 128 : i32
    %105 = vector.broadcast %c128_i32_31 : i32 to vector<8x128xi32>
    %106 = arith.select %104, %0, %105 : vector<8x128xi1>, vector<8x128xi32>
    %cst_32 = arith.constant dense<2147483647> : vector<8xi32>
    %107 = vector.multi_reduction <minsi>, %106, %cst_32 [1] : vector<8x128xi32> to vector<8xi32>
    %108 = vector.shape_cast %107 : vector<8xi32> to vector<8x1xi32>
    %109 = vector.broadcast %108 : vector<8x1xi32> to vector<8x128xi32>
    %110 = arith.cmpi eq, %0, %109 : vector<8x128xi32>
    %111 = arith.extui %110 : vector<8x128xi1> to vector<8x128xi32>
    %112 = arith.sitofp %111 : vector<8x128xi32> to vector<8x128xf32>
    %113 = arith.truncf %112 : vector<8x128xf32> to vector<8x128xbf16>
    %114 = vector.shape_cast %100 : vector<8x128xf32> to vector<1x8x128xf32>
    %c1 = arith.constant 1 : index
    %c0_33 = arith.constant 0 : index
    %c0_34 = arith.constant 0 : index
    %115 = vector.load %arg5[%c1, %c0_33, %c0_34] : memref<4x8x128xf32, #tpu.memory_space<vmem>>, vector<1x8x128xf32>
    tpu.vector_store %arg5[%c1, %c0_33, %c0_34], %114 {strides = array<i32>} : memref<4x8x128xf32, #tpu.memory_space<vmem>>, vector<1x8x128xf32>,
    %116 = arith.truncf %97 : vector<8x128xf32> to vector<8x128xbf16>
    %117 = tpu.concatenate %113, %116 in 1 : vector<8x128xbf16>, vector<8x128xbf16> -> vector<8x256xbf16>
    %cst_35 = arith.constant dense<0.000000e+00> : vector<8x512xf32>
    %118 = tpu.matmul %117, %8, %cst_35 {dimension_numbers = #tpu.dot_dimension_numbers<[1], [0], [0], [1], [0, 0, 1, 1], [], []>} : vector<8x256xbf16>, vector<256x512xbf16>, vector<8x512xf32> -> vector<8x512xf32>
    %119 = arith.addf %118, %10 : vector<8x512xf32>
    %120 = vector.extract_strided_slice %119 {offsets = [0, 0], sizes = [8, 128], strides = [1, 1]} : vector<8x512xf32> to vector<8x128xf32>
    %121 = arith.negf %120 : vector<8x128xf32>
    %122 = math.exp %121 : vector<8x128xf32>
    %cst_36 = arith.constant 1.000000e+00 : f32
    %123 = vector.broadcast %cst_36 : f32 to vector<8x128xf32>
    %124 = arith.addf %123, %122 : vector<8x128xf32>
    %125 = arith.divf %123, %124 : vector<8x128xf32>
    %126 = vector.extract_strided_slice %119 {offsets = [0, 128], sizes = [8, 128], strides = [1, 1]} : vector<8x512xf32> to vector<8x128xf32>
    %127 = arith.negf %126 : vector<8x128xf32>
    %128 = math.exp %127 : vector<8x128xf32>
    %cst_37 = arith.constant 1.000000e+00 : f32
    %129 = vector.broadcast %cst_37 : f32 to vector<8x128xf32>
    %130 = arith.addf %129, %128 : vector<8x128xf32>
    %131 = arith.divf %129, %130 : vector<8x128xf32>
    %132 = vector.extract_strided_slice %119 {offsets = [0, 256], sizes = [8, 128], strides = [1, 1]} : vector<8x512xf32> to vector<8x128xf32>
    %133 = math.tanh %132 : vector<8x128xf32>
    %134 = vector.extract_strided_slice %119 {offsets = [0, 384], sizes = [8, 128], strides = [1, 1]} : vector<8x512xf32> to vector<8x128xf32>
    %135 = arith.negf %134 : vector<8x128xf32>
    %136 = math.exp %135 : vector<8x128xf32>
    %cst_38 = arith.constant 1.000000e+00 : f32
    %137 = vector.broadcast %cst_38 : f32 to vector<8x128xf32>
    %138 = arith.addf %137, %136 : vector<8x128xf32>
    %139 = arith.divf %137, %138 : vector<8x128xf32>
    %140 = arith.mulf %131, %95 : vector<8x128xf32>
    %141 = arith.mulf %125, %133 : vector<8x128xf32>
    %142 = arith.addf %140, %141 : vector<8x128xf32>
    %143 = math.tanh %142 : vector<8x128xf32>
    %144 = arith.mulf %139, %143 : vector<8x128xf32>
    %145 = arith.truncf %144 : vector<8x128xf32> to vector<8x128xbf16>
    %cst_39 = arith.constant dense<0.000000e+00> : vector<8x128xf32>
    %146 = tpu.matmul %145, %9, %cst_39 {dimension_numbers = #tpu.dot_dimension_numbers<[1], [0], [0], [1], [0, 0, 1, 1], [], []>} : vector<8x128xbf16>, vector<128x128xbf16>, vector<8x128xf32> -> vector<8x128xf32>
    %147 = arith.addf %146, %13 : vector<8x128xf32>
    %cst_40 = arith.constant dense<0xFF800000> : vector<8xf32>
    %148 = vector.multi_reduction <maximumf>, %147, %cst_40 [1] : vector<8x128xf32> to vector<8xf32>
    %149 = vector.shape_cast %148 : vector<8xf32> to vector<8x1xf32>
    %150 = vector.broadcast %149 : vector<8x1xf32> to vector<8x128xf32>
    %151 = arith.cmpf oeq, %147, %150 : vector<8x128xf32>
    %c128_i32_41 = arith.constant 128 : i32
    %152 = vector.broadcast %c128_i32_41 : i32 to vector<8x128xi32>
    %153 = arith.select %151, %0, %152 : vector<8x128xi1>, vector<8x128xi32>
    %cst_42 = arith.constant dense<2147483647> : vector<8xi32>
    %154 = vector.multi_reduction <minsi>, %153, %cst_42 [1] : vector<8x128xi32> to vector<8xi32>
    %155 = vector.shape_cast %154 : vector<8xi32> to vector<8x1xi32>
    %156 = vector.broadcast %155 : vector<8x1xi32> to vector<8x128xi32>
    %157 = arith.cmpi eq, %0, %156 : vector<8x128xi32>
    %158 = arith.extui %157 : vector<8x128xi1> to vector<8x128xi32>
    %159 = arith.sitofp %158 : vector<8x128xi32> to vector<8x128xf32>
    %160 = arith.truncf %159 : vector<8x128xf32> to vector<8x128xbf16>
    %161 = vector.shape_cast %147 : vector<8x128xf32> to vector<1x8x128xf32>
    %c2 = arith.constant 2 : index
    %c0_43 = arith.constant 0 : index
    %c0_44 = arith.constant 0 : index
    %162 = vector.load %arg5[%c2, %c0_43, %c0_44] : memref<4x8x128xf32, #tpu.memory_space<vmem>>, vector<1x8x128xf32>
    tpu.vector_store %arg5[%c2, %c0_43, %c0_44], %161 {strides = array<i32>} : memref<4x8x128xf32, #tpu.memory_space<vmem>>, vector<1x8x128xf32>,
    %163 = arith.truncf %144 : vector<8x128xf32> to vector<8x128xbf16>
    %164 = tpu.concatenate %160, %163 in 1 : vector<8x128xbf16>, vector<8x128xbf16> -> vector<8x256xbf16>
    %cst_45 = arith.constant dense<0.000000e+00> : vector<8x512xf32>
    %165 = tpu.matmul %164, %8, %cst_45 {dimension_numbers = #tpu.dot_dimension_numbers<[1], [0], [0], [1], [0, 0, 1, 1], [], []>} : vector<8x256xbf16>, vector<256x512xbf16>, vector<8x512xf32> -> vector<8x512xf32>
    %166 = arith.addf %165, %10 : vector<8x512xf32>
    %167 = vector.extract_strided_slice %166 {offsets = [0, 0], sizes = [8, 128], strides = [1, 1]} : vector<8x512xf32> to vector<8x128xf32>
    %168 = arith.negf %167 : vector<8x128xf32>
    %169 = math.exp %168 : vector<8x128xf32>
    %cst_46 = arith.constant 1.000000e+00 : f32
    %170 = vector.broadcast %cst_46 : f32 to vector<8x128xf32>
    %171 = arith.addf %170, %169 : vector<8x128xf32>
    %172 = arith.divf %170, %171 : vector<8x128xf32>
    %173 = vector.extract_strided_slice %166 {offsets = [0, 128], sizes = [8, 128], strides = [1, 1]} : vector<8x512xf32> to vector<8x128xf32>
    %174 = arith.negf %173 : vector<8x128xf32>
    %175 = math.exp %174 : vector<8x128xf32>
    %cst_47 = arith.constant 1.000000e+00 : f32
    %176 = vector.broadcast %cst_47 : f32 to vector<8x128xf32>
    %177 = arith.addf %176, %175 : vector<8x128xf32>
    %178 = arith.divf %176, %177 : vector<8x128xf32>
    %179 = vector.extract_strided_slice %166 {offsets = [0, 256], sizes = [8, 128], strides = [1, 1]} : vector<8x512xf32> to vector<8x128xf32>
    %180 = math.tanh %179 : vector<8x128xf32>
    %181 = vector.extract_strided_slice %166 {offsets = [0, 384], sizes = [8, 128], strides = [1, 1]} : vector<8x512xf32> to vector<8x128xf32>
    %182 = arith.negf %181 : vector<8x128xf32>
    %183 = math.exp %182 : vector<8x128xf32>
    %cst_48 = arith.constant 1.000000e+00 : f32
    %184 = vector.broadcast %cst_48 : f32 to vector<8x128xf32>
    %185 = arith.addf %184, %183 : vector<8x128xf32>
    %186 = arith.divf %184, %185 : vector<8x128xf32>
    %187 = arith.mulf %178, %142 : vector<8x128xf32>
    %188 = arith.mulf %172, %180 : vector<8x128xf32>
    %189 = arith.addf %187, %188 : vector<8x128xf32>
    %190 = math.tanh %189 : vector<8x128xf32>
    %191 = arith.mulf %186, %190 : vector<8x128xf32>
    %192 = arith.truncf %191 : vector<8x128xf32> to vector<8x128xbf16>
    %cst_49 = arith.constant dense<0.000000e+00> : vector<8x128xf32>
    %193 = tpu.matmul %192, %9, %cst_49 {dimension_numbers = #tpu.dot_dimension_numbers<[1], [0], [0], [1], [0, 0, 1, 1], [], []>} : vector<8x128xbf16>, vector<128x128xbf16>, vector<8x128xf32> -> vector<8x128xf32>
    %194 = arith.addf %193, %13 : vector<8x128xf32>
    %cst_50 = arith.constant dense<0xFF800000> : vector<8xf32>
    %195 = vector.multi_reduction <maximumf>, %194, %cst_50 [1] : vector<8x128xf32> to vector<8xf32>
    %196 = vector.shape_cast %195 : vector<8xf32> to vector<8x1xf32>
    %197 = vector.broadcast %196 : vector<8x1xf32> to vector<8x128xf32>
    %198 = arith.cmpf oeq, %194, %197 : vector<8x128xf32>
    %c128_i32_51 = arith.constant 128 : i32
    %199 = vector.broadcast %c128_i32_51 : i32 to vector<8x128xi32>
    %200 = arith.select %198, %0, %199 : vector<8x128xi1>, vector<8x128xi32>
    %cst_52 = arith.constant dense<2147483647> : vector<8xi32>
    %201 = vector.multi_reduction <minsi>, %200, %cst_52 [1] : vector<8x128xi32> to vector<8xi32>
    %202 = vector.shape_cast %201 : vector<8xi32> to vector<8x1xi32>
    %203 = vector.broadcast %202 : vector<8x1xi32> to vector<8x128xi32>
    %204 = arith.cmpi eq, %0, %203 : vector<8x128xi32>
    %205 = arith.extui %204 : vector<8x128xi1> to vector<8x128xi32>
    %206 = arith.sitofp %205 : vector<8x128xi32> to vector<8x128xf32>
    %207 = arith.truncf %206 : vector<8x128xf32> to vector<8x128xbf16>
    %208 = vector.shape_cast %194 : vector<8x128xf32> to vector<1x8x128xf32>
    %c3 = arith.constant 3 : index
    %c0_53 = arith.constant 0 : index
    %c0_54 = arith.constant 0 : index
    %209 = vector.load %arg5[%c3, %c0_53, %c0_54] : memref<4x8x128xf32, #tpu.memory_space<vmem>>, vector<1x8x128xf32>
    tpu.vector_store %arg5[%c3, %c0_53, %c0_54], %208 {strides = array<i32>} : memref<4x8x128xf32, #tpu.memory_space<vmem>>, vector<1x8x128xf32>,
    %c0_55 = arith.constant 0 : index
    %c0_56 = arith.constant 0 : index
    %210 = vector.load %arg6[%c0_55, %c0_56] : memref<8x128xf32, #tpu.memory_space<vmem>>, vector<8x128xf32>
    tpu.vector_store %arg6[%c0_55, %c0_56], %191 {strides = array<i32>} : memref<8x128xf32, #tpu.memory_space<vmem>>, vector<8x128xf32>,
    %c0_57 = arith.constant 0 : index
    %c0_58 = arith.constant 0 : index
    %211 = vector.load %arg7[%c0_57, %c0_58] : memref<8x128xf32, #tpu.memory_space<vmem>>, vector<8x128xf32>
    tpu.vector_store %arg7[%c0_57, %c0_58], %189 {strides = array<i32>} : memref<8x128xf32, #tpu.memory_space<vmem>>, vector<8x128xf32>,
    %c0_59 = arith.constant 0 : index
    %c0_60 = arith.constant 0 : index
    %212 = vector.load %arg8[%c0_59, %c0_60] : memref<8x128xbf16, #tpu.memory_space<vmem>>, vector<8x128xbf16>
    tpu.vector_store %arg8[%c0_59, %c0_60], %207 {strides = array<i32>} : memref<8x128xbf16, #tpu.memory_space<vmem>>, vector<8x128xbf16>,
    return
  }
  func.func @transform_0(%arg0: i32) -> (i32, i32) {
    %c0_i32 = arith.constant 0 : i32
    %c0_i32_0 = arith.constant 0 : i32
    %c0_i32_1 = arith.constant 0 : i32
    return %c0_i32, %c0_i32_0 : i32, i32
  }
  func.func @transform_1(%arg0: i32) -> (i32, i32) {
    %c0_i32 = arith.constant 0 : i32
    %c0_i32_0 = arith.constant 0 : i32
    %c0_i32_1 = arith.constant 0 : i32
    return %c0_i32, %c0_i32_0 : i32, i32
  }
  func.func @transform_2(%arg0: i32) -> (i32, i32) {
    %c0_i32 = arith.constant 0 : i32
    %c0_i32_0 = arith.constant 0 : i32
    %c0_i32_1 = arith.constant 0 : i32
    return %c0_i32, %c0_i32_0 : i32, i32
  }
  func.func @transform_3(%arg0: i32) -> (i32, i32) {
    %c0_i32 = arith.constant 0 : i32
    %c0_i32_0 = arith.constant 0 : i32
    %c0_i32_1 = arith.constant 0 : i32
    return %c0_i32, %c0_i32_0 : i32, i32
  }
  func.func @transform_4(%arg0: i32) -> (i32, i32, i32) {
    %c0_i32 = arith.constant 0 : i32
    %c0_i32_0 = arith.constant 0 : i32
    %c0_i32_1 = arith.constant 0 : i32
    return %arg0, %c0_i32, %c0_i32_0 : i32, i32, i32
  }
}

</mosaic_0001>

<bundles_post_ra>
// kernel: tpu_custom_call.1
= control target key start
LH: loop header
LB: loop body
LE: loop exit
PB: predicated region body
PF: predicated region fallthrough
CT: control target
= control target key end

     0   :  { %9 = vsyncpa [#allocation6], 0  ;;  %s2935_s0 = inlined_call_operand.hbm [shape: bf16[256,512], index: 0, kind: input, shape index: {}]   ;;  %s2936_s1 = inlined_call_operand.hbm [shape: f32[8,512], index: 1, kind: input, shape index: {}]   ;;  %s2937_s2 = inlined_call_operand.hbm [shape: bf16[128,128], index: 2, kind: input, shape index: {}]   ;;  %s2938_s3 = inlined_call_operand.vmem [shape: f32[1,128], index: 3, kind: input, shape index: {}]   ;;  %s2939_s4 = inlined_call_operand.hbm [shape: f32[8,8,128], index: 4, kind: output, shape index: {}]  }
   0x1   :  { %10 = vsyncpa [#allocation9], 0 }
   0x2   :  { %11 = vsyncpa [#allocation7], 0 }
   0x3   :  { %13 = vsyncpa [#allocation7 + $0x1], 0  ;;  %s2190_s15 = smov 0   ;;  %s2192_s16 = smov 0  }
   0x4   :  { %s2194_s17 = smov 0   ;;  %s2196_s18 = smov 0  }
   0x5 LB: > { %s2211_s19 = sadd.s32 4294967295, %s2149_s18   ;;  %s1485_s20 = sadd.s32 4294967294, %s2149_s18   ;;  %s2149_s18 = sphi %s2196_s18, %s3135_s18   ;;  %s2145_s17 = sphi %s2194_s17, %s3134_s17   ;;  %s2141_s16 = sphi %s2192_s16, %s3133_s16   ;;  %s2137_s15 = sphi %s2190_s15, %s3132_s15  }
   0x6   : > { %s2215_s21 = sadd.s32 1, %s2149_s18   ;;  %s110_s22 = sadd.s32 1, %s2145_s17 }
   0x7   : > { %s107_s23 = ssub.s32 %s2149_s18, %s2215_s21  ;;  %p120_p0 = scmp.ne.s32.totalorder %s2145_s17, %s2141_s16 }
   0x8   : > { %p108_p1 = scmp.eq.s32.totalorder %s107_s23, 0  ;;  %p121_p2 = scmp.eq.s32.totalorder %s2211_s19, 1 }
   0x9   : > { %p126_p3 = scmp.ne.s32.totalorder %s2141_s16, %s2137_s15  ;;  %p127_p4 = scmp.eq.s32.totalorder %s1485_s20, 1 }
   0xa   : > { %s2226_s24 = scalar_select %p108_p1, %s2145_s17, %s110_s22  }
   0xb   : > { %p2228_p5 = por %p121_p2, %p120_p0  ;;  %p2232_p6 = por %p127_p4, %p126_p3 }
   0xc   : > { %p1486_p7 = scmp.ge.s32.totalorder %s2149_s18, 1  ;;  %p134_p8 = scmp.lt.s32.totalorder %s2149_s18, 3 }
   0xd   : > { %s3019_s25 = scalar_select %p2228_p5, 1, 0 }
   0xe   : > { %s3020_s26 = scalar_select %p2232_p6, 1, 0 }
   0xf   : > { %p2940_p10 = scmp.eq.s32.totalorder %s2211_s19, 0  ;;  %p2240_p11 = pnand %p1486_p7, %p134_p8 }
  0x10   : > { %s2151_s28 = smov [#allocation8]   ;;  %s2152_s30 = smov [#allocation5]  }
  0x11   : > { %s3021_s27 = scalar_select %p2240_p11, 1, 0 }
  0x12   : > { %s160_s29 = sshll.u32 %s2151_s28, 4  ;;  %p1733_p12 = pneg %p2240_p11  ;;  %s161_s29 = int_to_ptr.vmem [resolvable:$true] %s160_s29 }
  0x13   : > { %s146_s5 = sshll.u32 %s2152_s30, 4  ;;  %s2153_s7 = smov [#allocation10]   ;;  %s2252_s5 = int_to_ptr.vmem [resolvable:$true] %s146_s5 }
  0x14   : > { %p2248_p13 = pnand %p2940_p10, %p1733_p12  ;;  %s2254_s8 = sshll.u32 %s2153_s7, 4  ;;  %s171_s8 = int_to_ptr.vmem [resolvable:$true] %s2254_s8 }
  0x15   : > { %s1995_s11 = scalar_lea.hbm %s2936_s1, 512 }
  0x16   : > { %p1996_p0 = scmp.ne.s32.totalorder %s2936_s1, %s1995_s11  ;;  %p2264_p1 = pneg %p2248_p13 }
  0x17   : > { %p2002_p4 = scmp.lt.u32.totalorder %s1995_s11, %s2936_s1 }
  0x18   : > { %p1998_p2 = pnand %p2264_p1, %p1996_p0 }
  0x1a   : > { %p1999_p3 = pneg %p1998_p2 }
  0x1c   : > { %p2004_p7 = pnand %p2002_p4, %p1999_p3 }
  0x1e   : > { %2007 = shalt.err (!%p2004_p7)
}
  0x1f   : > { %s2008_s23 = scalar_lea.vmem %s161_s29, 512  ;;  %p2016_p10 = scmp.lt.s32.totalorder %s161_s29, %s161_s29 }
  0x20   : > { %p2009_p8 = scmp.ne.s32.totalorder %s161_s29, %s2008_s23  ;;  %p2017_p6 = scmp.lt.s32.totalorder %s2008_s23, %s2008_s23 }
  0x22   : > { %p2011_p12 = pnand %p2009_p8, %p2264_p1  ;;  %p2018_p5 = por %p2017_p6, %p2016_p10 }
  0x24   : > { %p2012_p9 = pneg %p2011_p12 }
  0x26   : > { %p2019_p11 = pnand %p2018_p5, %p2012_p9 }
  0x28   : > { %2022 = shalt.err (!%p2019_p11)
}
  0x29   : > { %1739 = dma.hbm_to_vmem [thread:$0]  (!%p2248_p13), %s2936_s1, 512, %s161_s29, [#allocation9]  }
  0x2a   : > { %s2023_s10 = scalar_lea.hbm %s2935_s0, 8192 }
  0x2b   : > { %p2024_p0 = scmp.ne.s32.totalorder %s2935_s0, %s2023_s10  ;;  %p2030_p5 = scmp.lt.u32.totalorder %s2023_s10, %s2935_s0 }
  0x2d   : > { %p2026_p2 = pnand %p2024_p0, %p2264_p1 }
  0x2f   : > { %p2027_p6 = pneg %p2026_p2 }
  0x31   : > { %p2032_p9 = pnand %p2030_p5, %p2027_p6 }
  0x33   : > { %2035 = shalt.err (!%p2032_p9)
}
  0x34   : > { %s2036_s29 = scalar_lea.vmem %s2252_s5, 8192  ;;  %p2044_p4 = scmp.lt.s32.totalorder %s2252_s5, %s2252_s5 }
  0x35   : > { %p2037_p10 = scmp.ne.s32.totalorder %s2252_s5, %s2036_s29  ;;  %p2045_p7 = scmp.lt.s32.totalorder %s2036_s29, %s2036_s29 }
  0x37   : > { %p2039_p11 = pnand %p2037_p10, %p2264_p1  ;;  %p2046_p8 = por %p2045_p7, %p2044_p4 }
  0x39   : > { %p2040_p3 = pneg %p2039_p11 }
  0x3b   : > { %p2047_p12 = pnand %p2046_p8, %p2040_p3 }
  0x3d   : > { %2050 = shalt.err (!%p2047_p12)
}
  0x3e   : > { %s2154_s22 = smov 256   ;;  %s2155_s23 = smov 16  }
  0x3f   : > { %1736 = dma.hbm_to_vmem [thread:$0]  (!%p2248_p13), %s2935_s0, 8192, %s2252_s5, [#allocation6], %s2154_s22, %s2154_s22, %s2155_s23  }
  0x40   : > { %s2051_s10 = scalar_lea.hbm %s2937_s2, 1024 }
  0x41   : > { %p2052_p0 = scmp.ne.s32.totalorder %s2937_s2, %s2051_s10  ;;  %p2058_p5 = scmp.lt.u32.totalorder %s2051_s10, %s2937_s2 }
  0x43   : > { %p2054_p2 = pnand %p2052_p0, %p2264_p1 }
  0x45   : > { %p2055_p6 = pneg %p2054_p2 }
  0x47   : > { %p2060_p9 = pnand %p2058_p5, %p2055_p6 }
  0x49   : > { %2063 = shalt.err (!%p2060_p9)
}
  0x4a   : > { %s2064_s29 = scalar_lea.vmem %s171_s8, 1024  ;;  %p2072_p4 = scmp.lt.s32.totalorder %s171_s8, %s171_s8 }
  0x4b   : > { %p2065_p10 = scmp.ne.s32.totalorder %s171_s8, %s2064_s29  ;;  %p2073_p7 = scmp.lt.s32.totalorder %s2064_s29, %s2064_s29 }
  0x4d   : > { %p2067_p11 = pnand %p2065_p10, %p2264_p1  ;;  %p2074_p8 = por %p2073_p7, %p2072_p4 }
  0x4f   : > { %p2068_p3 = pneg %p2067_p11 }
  0x51   : > { %p2075_p12 = pnand %p2074_p8, %p2068_p3 }
  0x53   : > { %2078 = shalt.err (!%p2075_p12)
}
  0x54   : > { %s2156_s5 = smov 64   ;;  %s2157_s22 = smov 4  }
  0x55   : > { %1742 = dma.hbm_to_vmem [thread:$0]  (!%p2248_p13), %s2937_s2, 1024, %s171_s8, [#allocation9], %s2156_s5, %s2156_s5, %s2157_s22  }
  0x56   : > { %p3024_p0 = scmp.ne.s32.totalorder %s3021_s27, 0 }
  0x58   : > { %189 = sbr.rel (%p3024_p0) target bundleno = 3838 (0xefe), region = 36 }
  0x5f   : > { %p3025_p2 = scmp.eq.s32.totalorder %s2211_s19, 0 }
  0x61   : > { %2124 = dma.done.wait (%p3025_p2), [#allocation6], 8192   ;;  %p3026_p1 = pmov %p3025_p2 }
  0x63   : > { %2126 = vsyncadd (%p3026_p1), [#allocation6], 4294959104  ;;  %p3027_p6 = pmov %p3026_p1 }
  0x64   : > { %p3028_p5 = pmov %p3026_p1 }
  0x65   : > { %2128 = dma.done.wait (%p3027_p6), [#allocation9], 1536  }
  0x66   : > { %2130 = vsyncadd (%p3028_p5), [#allocation9], 4294965760  ;;  %s215_s6 = sand.u32 1, %s2141_s16   ;;  %v220_v0 = vlaneseq  ;;  %v2943_v2 = vmov 0.0   ;;  %p3031_p13 = scmp.ne.s32.totalorder %s2211_s19, 0 }
  0x67   : > { %s1494_s8 = sshll.u32 %s215_s6, 5  ;;  %v2159_v5 = vmov (!%p3031_p13), 0.0  }
  0x68   : > { %v2335_v1 = vand.u32 127, %v220_v0  ;;  %s2341_s27 = scalar_lea.vmem [#allocation11], %s1494_s8  ;;  %228 = sbr.rel (%p3031_p13) target bundleno = 111 (0x6f), region = 52  ;;  %229 = vst [vmem:[#allocation2] sm:$0xff] (!%p3031_p13), %v2159_v5  ;;  %230 = vst [vmem:[#allocation3] sm:$0xff] (!%p3031_p13), %v2159_v5 }
  0x6a   : > { %3029 = vst [vmem:[#allocation15_spill] sm:$0xff] %v2335_v1  ;;  %vm222_vm0 = vcmp.eq.s32.totalorder %v2335_v1, 0 }
  0x6b   : > { %v2339_v3 = vsel %vm222_vm0, 1.0, %v2943_v2 }
  0x6c   : > { %3030 = vst [vmem:[#allocation16_spill] sm:$0xff] %v2339_v3  ;;  %v231_v4 = vpack.c.bf16 (!%p3031_p13), %v2339_v3, %v2339_v3 }
  0x6e   : > { %232 = vst [vmem:[#allocation4] sm:$0xf] (!%p3031_p13), %v231_v4 }
  0x6f PF: > { %v2347_v6 = vld [vmem:[#allocation5 + $0x4] ss:$16 sps:$4 sm:$0xff]   ;;  %v2349_v7 = vld [vmem:[#allocation5] ss:$16 sps:$4 sm:$0xff]   ;;  %v2360_v11 = vld [vmem:[#allocation5 + $0xc] ss:$16 sps:$4 sm:$0xff]  }
  0x70   : > { %648 = vmatprep.subr.bf16.mxu0 %v2347_v6  ;;  %v2352_v8 = vld [vmem:[#allocation5 + $0x24] ss:$16 sps:$4 sm:$0xff]   ;;  %v2355_v9 = vld [vmem:[#allocation5 + $0x20] ss:$16 sps:$4 sm:$0xff]   ;;  %3032 = vst [vmem:[#allocation17_spill] sm:$0xff] %v2360_v11  ;;  %689 = vmatprep.subr.bf16.mxu1 %v2360_v11  ;;  %vm2160_vm1 = vmmov 0  }
  0x71   : > { %649 = vmatpush1.bf16.msra.mxu0 %v2349_v7  ;;  %v2358_v10 = vld [vmem:[#allocation5 + $0x44] ss:$16 sps:$4 sm:$0xff]   ;;  %v2362_v12 = vld [vmem:[#allocation5 + $0x8] ss:$16 sps:$4 sm:$0xff]   ;;  %v2365_v13 = vld [vmem:[#allocation5 + $0x40] ss:$16 sps:$4 sm:$0xff]  }
  0x72   : > { %650 = vmatprep.subr.bf16.mxu0 %v2352_v8  ;;  %v2369_v14 = vld [vmem:[#allocation5 + $0x64] ss:$16 sps:$4 sm:$0xff]   ;;  %690 = vmatpush1.bf16.msra.mxu1 %v2362_v12  ;;  %v2372_v15 = vld [vmem:[#allocation5 + $0x2c] ss:$16 sps:$4 sm:$0xff]   ;;  %v2374_v16 = vld [vmem:[#allocation5 + $0x28] ss:$16 sps:$4 sm:$0xff]  }
  0x73   : > { %691 = vmatprep.subr.bf16.mxu1 %v2372_v15  ;;  %v2378_v17 = vld [vmem:[#allocation5 + $0x60] ss:$16 sps:$4 sm:$0xff]   ;;  %v2380_v18 = vld [vmem:[#allocation5 + $0x84] ss:$16 sps:$4 sm:$0xff]   ;;  %v2382_v19 = vld [vmem:[#allocation5 + $0x4c] ss:$16 sps:$4 sm:$0xff]  }
  0x74   : > { %v2386_v20 = vld [vmem:[#allocation5 + $0x48] ss:$16 sps:$4 sm:$0xff]   ;;  %v2389_v21 = vld [vmem:[#allocation5 + $0x6c] ss:$16 sps:$4 sm:$0xff]   ;;  %v2392_v22 = vld [vmem:[#allocation5 + $0x80] ss:$16 sps:$4 sm:$0xff]  }
  0x75   : > { %651 = vmatpush1.bf16.msra.mxu0 %v2355_v9  ;;  %v2395_v23 = vld [vmem:[#allocation5 + $0xa4] ss:$16 sps:$4 sm:$0xff]   ;;  %v2398_v24 = vld [vmem:[#allocation5 + $0x68] ss:$16 sps:$4 sm:$0xff]   ;;  %v2401_v25 = vld [vmem:[#allocation5 + $0x8c] ss:$16 sps:$4 sm:$0xff]  }
  0x76   : > { %652 = vmatprep.subr.bf16.mxu0 %v2358_v10  ;;  %692 = vmatpush1.bf16.msra.mxu1 %v2374_v16  ;;  %v2404_v26 = vld [vmem:[#allocation5 + $0xa0] ss:$16 sps:$4 sm:$0xff]   ;;  %v2406_v27 = vld [vmem:[#allocation5 + $0xc4] ss:$16 sps:$4 sm:$0xff]   ;;  %v2410_v28 = vld [vmem:[#allocation5 + $0x88] ss:$16 sps:$4 sm:$0xff]  }
  0x77   : > { %693 = vmatprep.subr.bf16.mxu1 %v2382_v19  ;;  %3033 = vst [vmem:[#allocation18_spill] sm:$0xff] %v2404_v26  ;;  %3034 = vst [vmem:[#allocation19_spill] sm:$0xff] %v2406_v27  ;;  %v2413_v29 = vld [vmem:[#allocation5 + $0xac] ss:$16 sps:$4 sm:$0xff]   ;;  %v2416_v30 = vld [vmem:[#allocation5 + $0xc0] ss:$16 sps:$4 sm:$0xff]  }
  0x78   : > { %3035 = vst [vmem:[#allocation20_spill] sm:$0xff] %v2416_v30  ;;  %v2419_v31 = vld [vmem:[#allocation5 + $0xe4] ss:$16 sps:$4 sm:$0xff]   ;;  %v2422_v32 = vld [vmem:[#allocation5 + $0xa8] ss:$16 sps:$4 sm:$0xff]   ;;  %v2463_v46 = vld [vmem:[#allocation2] sm:$0xff] }
  0x79   : > { %653 = vmatpush1.bf16.msra.mxu0 %v2365_v13  ;;  %3036 = vst [vmem:[#allocation21_spill] sm:$0xff] %v2419_v31  ;;  %v2425_v33 = vld [vmem:[#allocation5 + $0xcc] ss:$16 sps:$4 sm:$0xff]   ;;  %v2428_v34 = vld [vmem:[#allocation5 + $0xe0] ss:$16 sps:$4 sm:$0xff]   ;;  %v327_v48 = vpack.c.bf16 %v2463_v46, %v2463_v46  ;;  %p3068_p9 = scmp.eq.s32.totalorder %s2211_s19, 0 }
  0x7a   : > { %654 = vmatprep.subr.bf16.mxu0 %v2369_v14  ;;  %694 = vmatpush1.bf16.msra.mxu1 %v2386_v20  ;;  %3037 = vst [vmem:[#allocation22_spill] sm:$0xff] %v2428_v34  ;;  %v2430_v35 = vld [vmem:[#allocation5 + $0x104] ss:$16 sps:$4 sm:$0xff]   ;;  %v2434_v36 = vld [vmem:[#allocation5 + $0xc8] ss:$16 sps:$4 sm:$0xff]   ;;  %s1602_s9 = sshll.u32 %s2211_s19, 9 }
  0x7b   : > { %695 = vmatprep.subr.bf16.mxu1 %v2389_v21  ;;  %3038 = vst [vmem:[#allocation23_spill] sm:$0xff] %v2430_v35  ;;  %v2437_v37 = vld [vmem:[#allocation5 + $0xec] ss:$16 sps:$4 sm:$0xff]   ;;  %v2440_v38 = vld [vmem:[#allocation5 + $0x100] ss:$16 sps:$4 sm:$0xff]   ;;  %680 = vmatprep.mubr.bf16.mxu0 %v327_v48  ;;  %s1404_s10 = sshll.u32 %s2341_s27, 4  ;;  %s2886_s13 = scalar_lea.hbm %s2939_s4, %s1602_s9  ;;  %s2888_s10 = int_to_ptr.vmem [resolvable:$true] %s1404_s10 }
  0x7c   : > { %3039 = vst [vmem:[#allocation24_spill] sm:$0xff] %v2440_v38  ;;  %v2443_v39 = vld [vmem:[#allocation5 + $0x124] ss:$16 sps:$4 sm:$0xff]   ;;  %v2446_v40 = vld [vmem:[#allocation5 + $0xe8] ss:$16 sps:$4 sm:$0xff]   ;;  %721 = vmatprep.mubr.bf16.mxu1 %v327_v48  ;;  %s2892_s20 = scalar_lea.sflag [#allocation7], %s215_s6 }
  0x7d   : > { %655 = vmatpush1.bf16.msra.mxu0 %v2378_v17  ;;  %3040 = vst [vmem:[#allocation25_spill] sm:$0xff] %v2443_v39  ;;  %v2449_v41 = vld [vmem:[#allocation5 + $0x10c] ss:$16 sps:$4 sm:$0xff]   ;;  %v2452_v42 = vld [vmem:[#allocation5 + $0x120] ss:$16 sps:$4 sm:$0xff]   ;;  %s2079_s29 = scalar_lea.vmem %s2888_s10, 512 }
  0x7e   : > { %656 = vmatprep.subr.bf16.mxu0 %v2380_v18  ;;  %696 = vmatpush1.bf16.msra.mxu1 %v2398_v24  ;;  %3041 = vst [vmem:[#allocation26_spill] sm:$0xff] %v2452_v42  ;;  %v2454_v43 = vld [vmem:[#allocation5 + $0x144] ss:$16 sps:$4 sm:$0xff]   ;;  %v2458_v44 = vld [vmem:[#allocation5 + $0x108] ss:$16 sps:$4 sm:$0xff]   ;;  %p2080_p10 = scmp.ne.s32.totalorder %s2888_s10, %s2079_s29  ;;  %p3130_p11 = scmp.ne.s32.totalorder %s3019_s25, 0 }
  0x7f   : > { %697 = vmatprep.subr.bf16.mxu1 %v2401_v25  ;;  %3042 = vst [vmem:[#allocation27_spill] sm:$0xff] %v2454_v43  ;;  %v2461_v45 = vld [vmem:[#allocation5 + $0x12c] ss:$16 sps:$4 sm:$0xff]   ;;  %v2466_v47 = vld [vmem:[#allocation5 + $0x140] ss:$16 sps:$4 sm:$0xff]   ;;  %s2162_s19 = smov [#allocation11]  }
  0x80   : > { %3043 = vst [vmem:[#allocation28_spill] sm:$0xff] %v2466_v47  ;;  %v2471_v49 = vld [vmem:[#allocation5 + $0x164] ss:$16 sps:$4 sm:$0xff]   ;;  %v2474_v50 = vld [vmem:[#allocation5 + $0x128] ss:$16 sps:$4 sm:$0xff]   ;;  %p2081_p3 = pnand %p2080_p10, %p3130_p11  ;;  %s2083_s5 = sshll.u32 %s2162_s19, 4  ;;  %s2084_s5 = int_to_ptr.vmem [resolvable:$false] %s2083_s5 }
  0x81   : > { %657 = vmatpush1.bf16.msra.mxu0 %v2392_v22  ;;  %3044 = vst [vmem:[#allocation29_spill] sm:$0xff] %v2471_v49  ;;  %v2476_v51 = vld [vmem:[#allocation5 + $0x160] ss:$16 sps:$4 sm:$0xff]   ;;  %v2479_v52 = vld [vmem:[#allocation5 + $0x14c] ss:$16 sps:$4 sm:$0xff]   ;;  %s2085_s22 = scalar_lea.vmem %s2084_s5, 1024  ;;  %p2086_p7 = scmp.lt.s32.totalorder %s2888_s10, %s2084_s5 }
  0x82   : > { %658 = vmatprep.subr.bf16.mxu0 %v2395_v23  ;;  %698 = vmatpush1.bf16.msra.mxu1 %v2410_v28  ;;  %3045 = vst [vmem:[#allocation30_spill] sm:$0xff] %v2476_v51  ;;  %v2481_v53 = vld [vmem:[#allocation5 + $0x184] ss:$16 sps:$4 sm:$0xff]   ;;  %v2484_v54 = vld [vmem:[#allocation5 + $0x148] ss:$16 sps:$4 sm:$0xff]   ;;  %p2082_p4 = pneg %p2081_p3  ;;  %p2087_p8 = scmp.lt.s32.totalorder %s2085_s22, %s2079_s29 }
  0x83   : > { %699 = vmatprep.subr.bf16.mxu1 %v2413_v29  ;;  %3046 = vst [vmem:[#allocation31_spill] sm:$0xff] %v2481_v53  ;;  %v2486_v55 = vld [vmem:[#allocation5 + $0x16c] ss:$16 sps:$4 sm:$0xff]   ;;  %v2490_v56 = vld [vmem:[#allocation5 + $0x180] ss:$16 sps:$4 sm:$0xff]  }
  0x84   : > { %3047 = vst [vmem:[#allocation32_spill] sm:$0xff] %v2490_v56  ;;  %v2493_v57 = vld [vmem:[#allocation5 + $0x1a4] ss:$16 sps:$4 sm:$0xff]   ;;  %v2495_v58 = vld [vmem:[#allocation5 + $0x168] ss:$16 sps:$4 sm:$0xff]   ;;  %p2088_p12 = por %p2087_p8, %p2086_p7 }
  0x85   : > { %659 = vmatpush1.bf16.msra.mxu0 %v2404_v26  ;;  %3048 = vst [vmem:[#allocation33_spill] sm:$0xff] %v2493_v57  ;;  %v2501_v59 = vld [vmem:[#allocation5 + $0x18c] ss:$16 sps:$4 sm:$0xff]   ;;  %v2504_v60 = vld [vmem:[#allocation5 + $0x1a0] ss:$16 sps:$4 sm:$0xff]  }
  0x86   : > { %660 = vmatprep.subr.bf16.mxu0 %v2406_v27  ;;  %700 = vmatpush1.bf16.msra.mxu1 %v2422_v32  ;;  %3049 = vst [vmem:[#allocation34_spill] sm:$0xff] %v2501_v59  ;;  %3050 = vst [vmem:[#allocation35_spill] sm:$0xff] %v2504_v60  ;;  %v2507_v61 = vld [vmem:[#allocation5 + $0x1c4] ss:$16 sps:$4 sm:$0xff]   ;;  %v2510_v62 = vld [vmem:[#allocation5 + $0x188] ss:$16 sps:$4 sm:$0xff]   ;;  %p2089_p0 = pnand %p2088_p12, %p2082_p4 }
  0x87   : > { %701 = vmatprep.subr.bf16.mxu1 %v2425_v33  ;;  %3051 = vst [vmem:[#allocation36_spill] sm:$0xff] %v2507_v61  ;;  %3052 = vst [vmem:[#allocation37_spill] sm:$0xff] %v2510_v62  ;;  %v2513_v63 = vld [vmem:[#allocation5 + $0x1ac] ss:$16 sps:$4 sm:$0xff]   ;;  %v2516_v0 = vld [vmem:[#allocation5 + $0x1c0] ss:$16 sps:$4 sm:$0xff]  }
  0x88   : > { %3053 = vst [vmem:[#allocation38_spill] sm:$0xff] %v2513_v63  ;;  %3054 = vst [vmem:[#allocation39_spill] sm:$0xff] %v2516_v0  ;;  %v2519_v4 = vld [vmem:[#allocation5 + $0x1e4] ss:$16 sps:$4 sm:$0xff]   ;;  %v2522_v5 = vld [vmem:[#allocation5 + $0x1a8] ss:$16 sps:$4 sm:$0xff]  }
  0x89   : > { %661 = vmatpush1.bf16.msra.mxu0 %v2416_v30  ;;  %3055 = vst [vmem:[#allocation40_spill] sm:$0xff] %v2519_v4  ;;  %3056 = vst [vmem:[#allocation41_spill] sm:$0xff] %v2522_v5  ;;  %v2525_v48 = vld [vmem:[#allocation5 + $0x1cc] ss:$16 sps:$4 sm:$0xff]   ;;  %v2528_v2 = vld [vmem:[#allocation5 + $0x1e0] ss:$16 sps:$4 sm:$0xff]  }
  0x8a   : > { %662 = vmatprep.subr.bf16.mxu0 %v2419_v31  ;;  %702 = vmatpush1.bf16.msra.mxu1 %v2434_v36  ;;  %3057 = vst [vmem:[#allocation42_spill] sm:$0xff] %v2525_v48  ;;  %3058 = vst [vmem:[#allocation43_spill] sm:$0xff] %v2528_v2  ;;  %v2532_v1 = vld [vmem:[#allocation5 + $0x1c8] ss:$16 sps:$4 sm:$0xff]   ;;  %v2535_v3 = vld [vmem:[#allocation5 + $0x1ec] ss:$16 sps:$4 sm:$0xff]  }
  0x8b   : > { %703 = vmatprep.subr.bf16.mxu1 %v2437_v37  ;;  %3059 = vst [vmem:[#allocation44_spill] sm:$0xff] %v2532_v1  ;;  %3060 = vst [vmem:[#allocation45_spill] sm:$0xff] %v2535_v3  ;;  %s865_s14 = scalar_select %p3068_p9, 1, 0 }
  0x8d   : > { %663 = vmatpush1.bf16.msra.mxu0 %v2428_v34 }
  0x8e   : > { %664 = vmatprep.subr.bf16.mxu0 %v2430_v35  ;;  %704 = vmatpush1.bf16.msra.mxu1 %v2446_v40 }
  0x8f   : > { %705 = vmatprep.subr.bf16.mxu1 %v2449_v41 }
  0x91   : > { %665 = vmatpush1.bf16.msra.mxu0 %v2440_v38 }
  0x92   : > { %666 = vmatprep.subr.bf16.mxu0 %v2443_v39  ;;  %706 = vmatpush1.bf16.msra.mxu1 %v2458_v44 }
  0x93   : > { %707 = vmatprep.subr.bf16.mxu1 %v2461_v45 }
  0x95   : > { %667 = vmatpush1.bf16.msra.mxu0 %v2452_v42 }
  0x96   : > { %668 = vmatprep.subr.bf16.mxu0 %v2454_v43  ;;  %708 = vmatpush1.bf16.msra.mxu1 %v2474_v50 }
  0x97   : > { %709 = vmatprep.subr.bf16.mxu1 %v2479_v52 }
  0x99   : > { %669 = vmatpush1.bf16.msra.mxu0 %v2466_v47 }
  0x9a   : > { %670 = vmatprep.subr.bf16.mxu0 %v2471_v49  ;;  %710 = vmatpush1.bf16.msra.mxu1 %v2484_v54 }
  0x9b   : > { %711 = vmatprep.subr.bf16.mxu1 %v2486_v55 }
  0x9d   : > { %671 = vmatpush1.bf16.msra.mxu0 %v2476_v51 }
  0x9e   : > { %672 = vmatprep.subr.bf16.mxu0 %v2481_v53  ;;  %712 = vmatpush1.bf16.msra.mxu1 %v2495_v58 }
  0x9f   : > { %713 = vmatprep.subr.bf16.mxu1 %v2501_v59  ;;  %v3062_v59 = vmov 0.0  }
  0xa1   : > { %673 = vmatpush1.bf16.msra.mxu0 %v2490_v56 }
  0xa2   : > { %674 = vmatprep.subr.bf16.mxu0 %v2493_v57  ;;  %714 = vmatpush1.bf16.msra.mxu1 %v2510_v62  ;;  %v2538_v62 = vld [vmem:[#allocation4] sm:$0xf] }
  0xa3   : > { %715 = vmatprep.subr.bf16.mxu1 %v2513_v63  ;;  %v2541_v63 = vld [vmem:[#allocation5 + $0x1e8] ss:$16 sps:$4 sm:$0xff]  }
  0xa4   : > { %3061 = vst [vmem:[#allocation46_spill] sm:$0xff] %v2541_v63 }
  0xa5   : > { %675 = vmatpush1.bf16.msra.mxu0 %v2504_v60 }
  0xa6   : > { %676 = vmatprep.subr.bf16.mxu0 %v2507_v61  ;;  %716 = vmatpush1.bf16.msra.mxu1 %v2522_v5 }
  0xa7   : > { %717 = vmatprep.subr.bf16.mxu1 %v2525_v48 }
  0xa9   : > { %677 = vmatpush1.bf16.msra.mxu0 %v2516_v0 }
  0xaa   : > { %678 = vmatprep.subr.bf16.mxu0 %v2519_v4  ;;  %718 = vmatpush1.bf16.msra.mxu1 %v2532_v1 }
  0xab   : > { %719 = vmatprep.subr.bf16.mxu1 %v2535_v3 }
  0xad   : > { %679 = vmatpush1.bf16.msra.mxu0 %v2528_v2 }
  0xae   : > { %1639 = vmatprep.subr.bf16.mxu0 %v3062_v59  ;;  %720 = vmatpush1.bf16.msra.mxu1 %v2541_v63 }
  0xaf   : > { %874 = vmatprep.subr.bf16.mxu1 %v2347_v6 }
  0xb0   : > { %681 = vmatmul.mubr.bf16.vlgmr.msra.gmra.mrb[0].mxu0 %v2538_v62 }
  0xb1   : > { %722 = vmatmul.mubr.bf16.vlgmr.msra.gmra.mrb[0].mxu1 %v2538_v62  ;;  %1655 = vmatprep.mubr.msk.bf16.mxu0 %vm2160_vm1, %v3062_v59 }
  0xb2   : > { %875 = vmatpush1.bf16.msra.mxu1 %v2349_v7 }
  0xb3   : > { %876 = vmatprep.subr.bf16.mxu1 %v2352_v8 }
  0xb6   : > { %877 = vmatpush1.bf16.msra.mxu1 %v2355_v9 }
  0xb7   : > { %878 = vmatprep.subr.bf16.mxu1 %v2358_v10 }
  0xba   : > { %879 = vmatpush1.bf16.msra.mxu1 %v2365_v13 }
  0xbb   : > { %880 = vmatprep.subr.bf16.mxu1 %v2369_v14 }
  0xbe   : > { %881 = vmatpush1.bf16.msra.mxu1 %v2378_v17 }
  0xbf   : > { %882 = vmatprep.subr.bf16.mxu1 %v2380_v18 }
  0xc2   : > { %883 = vmatpush1.bf16.msra.mxu1 %v2392_v22 }
  0xc3   : > { %884 = vmatprep.subr.bf16.mxu1 %v2395_v23 }
  0xc6   : > { %885 = vmatpush1.bf16.msra.mxu1 %v2404_v26 }
  0xc7   : > { %886 = vmatprep.subr.bf16.mxu1 %v2406_v27 }
  0xca   : > { %887 = vmatpush1.bf16.msra.mxu1 %v2416_v30  ;;  %v2621_v30 = vld [vmem:[#allocation8 + $0x18] sm:$0xff] }
  0xcb   : > { %888 = vmatprep.subr.bf16.mxu1 %v2419_v31  ;;  %3067 = vst [vmem:[#allocation51_spill] sm:$0xff] %v2621_v30 }
  0xce   : > { %889 = vmatpush1.bf16.msra.mxu1 %v2428_v34 }
  0xcf   : > { %890 = vmatprep.subr.bf16.mxu1 %v2430_v35 }
  0xd2   : > { %891 = vmatpush1.bf16.msra.mxu1 %v2440_v38 }
  0xd3   : > { %892 = vmatprep.subr.bf16.mxu1 %v2443_v39 }
  0xd6   : > { %893 = vmatpush1.bf16.msra.mxu1 %v2452_v42 }
  0xd7   : > { %894 = vmatprep.subr.bf16.mxu1 %v2454_v43 }
  0xda   : > { %895 = vmatpush1.bf16.msra.mxu1 %v2466_v47 }
  0xdb   : > { %896 = vmatprep.subr.bf16.mxu1 %v2471_v49  ;;  %v2581_v49 = vld [vmem:[#allocation10] sm:$0xff]  }
  0xdc   : > { %1640 = vmatpush3.bf16.msra.mxu0 %v2581_v49 }
  0xdd   : > { %1641 = vmatprep.subr.bf16.mxu0 %v3062_v59 }
  0xde   : > { %897 = vmatpush1.bf16.msra.mxu1 %v2476_v51  ;;  %v2617_v51 = vld [vmem:[#allocation8 + $0x8] sm:$0xff] }
  0xdf   : > { %898 = vmatprep.subr.bf16.mxu1 %v2481_v53  ;;  %v2615_v53 = vld [vmem:[#allocation8] sm:$0xff] }
  0xe0   : > { %3066 = vst [vmem:[#allocation50_spill] sm:$0xff] %v2615_v53 }
  0xe2   : > { %899 = vmatpush1.bf16.msra.mxu1 %v2490_v56  ;;  %v2585_v56 = vld [vmem:[#allocation10 + $0x8] sm:$0xff]  }
  0xe3   : > { %900 = vmatprep.subr.bf16.mxu1 %v2493_v57  ;;  %1642 = vmatpush3.bf16.msra.mxu0 %v2585_v56  ;;  %v2610_v57 = vld [vmem:[#allocation10 + $0x38] sm:$0xff]  }
  0xe4   : > { %1643 = vmatprep.subr.bf16.mxu0 %v3062_v59  ;;  %3065 = vst [vmem:[#allocation49_spill] sm:$0xff] %v2610_v57 }
  0xe6   : > { %901 = vmatpush1.bf16.msra.mxu1 %v2504_v60  ;;  %v2606_v60 = vld [vmem:[#allocation10 + $0x30] sm:$0xff]  }
  0xe7   : > { %902 = vmatprep.subr.bf16.mxu1 %v2507_v61  ;;  %v2589_v61 = vld [vmem:[#allocation10 + $0x10] sm:$0xff]   ;;  %3064 = vst [vmem:[#allocation48_spill] sm:$0xff] %v2606_v60 }
  0xe8   : > { %1644 = vmatpush3.bf16.msra.mxu0 %v2589_v61 }
  0xe9   : > { %1645 = vmatprep.subr.bf16.mxu0 %v3062_v59 }
  0xea   : > { %903 = vmatpush1.bf16.msra.mxu1 %v2516_v0  ;;  %v2600_v0 = vld [vmem:[#allocation10 + $0x28] sm:$0xff]  }
  0xeb   : > { %904 = vmatprep.subr.bf16.mxu1 %v2519_v4  ;;  %v2597_v4 = vld [vmem:[#allocation10 + $0x20] sm:$0xff]   ;;  %3063 = vst [vmem:[#allocation47_spill] sm:$0xff] %v2600_v0 }
  0xee   : > { %905 = vmatpush1.bf16.msra.mxu1 %v2528_v2  ;;  %v2593_v2 = vld [vmem:[#allocation10 + $0x18] sm:$0xff]  }
  0xef   : > { %1659 = vmatprep.subr.bf16.mxu1 %v3062_v59  ;;  %1646 = vmatpush3.bf16.msra.mxu0 %v2593_v2 }
  0xf0   : > { %1647 = vmatprep.subr.bf16.mxu0 %v3062_v59 }
  0xf3   : > { %1648 = vmatpush3.bf16.msra.mxu0 %v2597_v4 }
  0xf4   : > { %1649 = vmatprep.subr.bf16.mxu0 %v3062_v59 }
  0xf7   : > { %1650 = vmatpush3.bf16.msra.mxu0 %v2600_v0  ;;  %v2624_v0 = vld [vmem:[#allocation8 + $0x10] sm:$0xff] }
  0xf8   : > { %1651 = vmatprep.subr.bf16.mxu0 %v3062_v59 }
  0xfb   : > { %1652 = vmatpush3.bf16.msra.mxu0 %v2606_v60 }
  0xfc   : > { %1653 = vmatprep.subr.bf16.mxu0 %v3062_v59 }
  0xff   : > { %1654 = vmatpush3.bf16.msra.mxu0 %v2610_v57 }
 0x100   : > { %915 = vmatprep.subr.bf16.mxu0 %v2360_v11 }
 0x183   : > { %v682_v47 = vpop.f32.mrb[0].mxu0 }
 0x184   : > { %v683_v43 = vadd.f32 %v682_v47, %v2615_v53  ;;  %v684_v42 = vpop.f32.mrb[1].mxu0  ;;  %v723_v57 = vpop.f32.mrb[0].mxu1 }
 0x185   : > { %v685_v39 = vadd.f32 %v684_v42, %v2617_v51  ;;  %v686_v38 = vpop.f32.mrb[2].mxu0  ;;  %v725_v11 = vpop.f32.mrb[1].mxu1  ;;  %v724_v53 = vadd.f32 %v723_v57, %v2624_v0 }
 0x186   : > { %v1562_v35 = vmul.f32 -1.442695, %v683_v43  ;;  %v687_v34 = vpop.f32.mrb[3].mxu0  ;;  %v726_v60 = vadd.f32 %v725_v11, %v2621_v30  ;;  %v727_v27 = vpop.f32.mrb[2].mxu1  ;;  %v2627_v43 = vld [vmem:[#allocation3] sm:$0xff] }
 0x187   : > { %v1563_v31 = vmul.f32 -1.442695, %v685_v39  ;;  %v728_v26 = vpop.f32.mrb[3].mxu1 }
 0x188   : > { %1903 = vpow2.f32 %v1562_v35  ;;  %v1564_v47 = vmul.f32 -1.442695, %v726_v60 }
 0x189   : > { %1905 = vpow2.f32 %v1563_v31 }
 0x18a   : > { %1907 = vpow2.f32 %v1564_v47  ;;  %v866_v47 = vstv %s865_s14 }
 0x18b   : > { %1909 = vtanh.f32 %v724_v53  ;;  %vm2635_vm2 = vcmp.eq.s32.totalorder %v866_v47, 1 }
 0x192   : > { %v1904_v42 = vpop.eup %1903 }
 0x193   : > { %v1906_v38 = vpop.eup %1905  ;;  %v733_v34 = vadd.f32 1.0, %v1904_v42 }
 0x194   : > { %v739_v39 = vadd.f32 1.0, %v1906_v38  ;;  %v1908_v31 = vpop.eup %1907 }
 0x195   : > { %1911 = vrcp.f32 %v733_v34  ;;  %v1910_v35 = vpop.eup %1909  ;;  %v746_v26 = vadd.f32 1.0, %v1908_v31 }
 0x196   : > { %1913 = vrcp.f32 %v739_v39 }
 0x197   : > { %1915 = vrcp.f32 %v746_v26  ;;  %v2677_v26 = vld [vmem:[%s2938_s3] ss:$0 sm:$0xff] }
 0x19f   : > { %v1912_v11 = vpop.eup %1911 }
 0x1a0   : > { %v1914_v27 = vpop.eup %1913  ;;  %v750_v30 = vmul.f32 %v1912_v11, %v1910_v35  ;;  %v3072_v35 = vld [vmem:[#allocation37_spill] sm:$0xff]  ;;  %v3073_v11 = vld [vmem:[#allocation38_spill] sm:$0xff] }
 0x1a1   : > { %v749_v60 = vmul.f32 %v1914_v27, %v2627_v43  ;;  %v1916_v53 = vpop.eup %1915 }
 0x1a3   : > { %v2630_v57 = vadd.f32 %v750_v30, %v749_v60 }
 0x1a5   : > { %1917 = vtanh.f32 %v2630_v57 }
 0x1af   : > { %v1918_v42 = vpop.eup %1917 }
 0x1b0   : > { %v753_v38 = vmul.f32 %v1918_v42, %v1916_v53  ;;  %v3075_v42 = vld [vmem:[#allocation16_spill] sm:$0xff] }
 0x1b2   : > { %v754_v39 = vpack.c.bf16 %v753_v38, %v753_v38  ;;  %v869_v31 = vsel %vm2635_vm2, %v2463_v46, %v753_v38  ;;  %v3071_v46 = vld [vmem:[#allocation34_spill] sm:$0xff] }
 0x1b3   : > { %v873_v30 = vpack.c.bf16 %v869_v31, %v869_v31  ;;  %3074 = vst [vmem:[#allocation34_spill] sm:$0xff] %v2677_v26 }
 0x1b4   : > { %1656 = vmatmul.mubr.bf16.vlgmr.msra.gmra.mrb[4].mxu0 %v754_v39 }
 0x1b5   : > { %906 = vmatprep.mubr.bf16.mxu1 %v873_v30  ;;  %947 = vmatprep.mubr.bf16.mxu0 %v873_v30 }
 0x1b6   : > { %916 = vmatpush1.bf16.msra.mxu0 %v2362_v12 }
 0x1b7   : > { %917 = vmatprep.subr.bf16.mxu0 %v2372_v15 }
 0x1ba   : > { %918 = vmatpush1.bf16.msra.mxu0 %v2374_v16 }
 0x1bb   : > { %919 = vmatprep.subr.bf16.mxu0 %v2382_v19 }
 0x1be   : > { %920 = vmatpush1.bf16.msra.mxu0 %v2386_v20 }
 0x1bf   : > { %921 = vmatprep.subr.bf16.mxu0 %v2389_v21 }
 0x1c2   : > { %922 = vmatpush1.bf16.msra.mxu0 %v2398_v24 }
 0x1c3   : > { %923 = vmatprep.subr.bf16.mxu0 %v2401_v25 }
 0x1c6   : > { %924 = vmatpush1.bf16.msra.mxu0 %v2410_v28 }
 0x1c7   : > { %925 = vmatprep.subr.bf16.mxu0 %v2413_v29 }
 0x1ca   : > { %926 = vmatpush1.bf16.msra.mxu0 %v2422_v32 }
 0x1cb   : > { %927 = vmatprep.subr.bf16.mxu0 %v2425_v33 }
 0x1ce   : > { %928 = vmatpush1.bf16.msra.mxu0 %v2434_v36 }
 0x1cf   : > { %929 = vmatprep.subr.bf16.mxu0 %v2437_v37 }
 0x1d2   : > { %930 = vmatpush1.bf16.msra.mxu0 %v2446_v40 }
 0x1d3   : > { %931 = vmatprep.subr.bf16.mxu0 %v2449_v41 }
 0x1d6   : > { %932 = vmatpush1.bf16.msra.mxu0 %v2458_v44 }
 0x1d7   : > { %933 = vmatprep.subr.bf16.mxu0 %v2461_v45 }
 0x1da   : > { %934 = vmatpush1.bf16.msra.mxu0 %v2474_v50 }
 0x1db   : > { %935 = vmatprep.subr.bf16.mxu0 %v2479_v52 }
 0x1de   : > { %936 = vmatpush1.bf16.msra.mxu0 %v2484_v54 }
 0x1df   : > { %937 = vmatprep.subr.bf16.mxu0 %v2486_v55 }
 0x1e2   : > { %938 = vmatpush1.bf16.msra.mxu0 %v2495_v58 }
 0x1e3   : > { %939 = vmatprep.subr.bf16.mxu0 %v3071_v46 }
 0x1e6   : > { %940 = vmatpush1.bf16.msra.mxu0 %v3072_v35 }
 0x1e7   : > { %941 = vmatprep.subr.bf16.mxu0 %v3073_v11 }
 0x1ea   : > { %942 = vmatpush1.bf16.msra.mxu0 %v2522_v5 }
 0x1eb   : > { %943 = vmatprep.subr.bf16.mxu0 %v2525_v48 }
 0x1ee   : > { %944 = vmatpush1.bf16.msra.mxu0 %v2532_v1 }
 0x1ef   : > { %945 = vmatprep.subr.bf16.mxu0 %v2535_v3 }
 0x1f2   : > { %946 = vmatpush1.bf16.msra.mxu0 %v2541_v63 }
 0x1f3   : > { %1045 = vmatprep.subr.bf16.mxu0 %v2347_v6  ;;  %v3076_v6 = vld [vmem:[#allocation15_spill] sm:$0xff] }
 0x287   : > { %v837_v27 = vpop.f32.mrb[4].mxu0 }
 0x288   : > { %v838_v60 = vadd.f32 %v2677_v26, %v837_v27  ;;  %v1657_v53 = vpop.f32.mrb[5].mxu0 }
 0x289   : > { %v840_v47 = vpop.f32.mrb[6].mxu0 }
 0x28a   : > { %v868_v38 = vsel %vm2635_vm2, %v3075_v42, %v838_v60  ;;  %843 = vmax.xlane.f32.xlu0 %v838_v60  ;;  %v1658_v39 = vpop.f32.mrb[7].mxu0 }
 0x28b   : > { %872 = vst [vmem:[%s2341_s27] sm:$0xff] %v868_v38  ;;  %v3092_v39 = vld [vmem:[#allocation29_spill] sm:$0xff] }
 0x317   : > { %v844_v31 = vpop.xlane.xlu0 %843 }
 0x318   : > { %vm845_vm3 = vcmp.eq.f32.partialorder %v838_v60, %v844_v31  ;;  %v3093_v31 = vld [vmem:[#allocation30_spill] sm:$0xff] }
 0x319   : > { %v846_v30 = vsel %vm845_vm3, %v3076_v6, 128 }
 0x31a   : > { %v848_v63 = vshra.s32 %v846_v30, 16  ;;  %v847_v1 = vand.u32 65535, %v846_v30  ;;  %v3094_v30 = vld [vmem:[#allocation31_spill] sm:$0xff] }
 0x31c   : > { %v850_v3 = vcvt.s32.f32 %v848_v63  ;;  %v849_v5 = vcvt.s32.f32 %v847_v1  ;;  %v3077_v1 = vld [vmem:[#allocation47_spill] sm:$0xff] }
 0x31e   : > { %851 = vmin.xlane.f32.xlu0 %v850_v3 }
 0x3ab   : > { %v852_v48 = vpop.xlane.xlu0 %851 }
 0x3ac   : > { %vm853_vm4 = vcmp.eq.f32.partialorder %v850_v3, %v852_v48  ;;  %v858_v53 = vcvt.f32.s32 %v852_v48  ;;  %v3078_v3 = vld [vmem:[#allocation18_spill] sm:$0xff] }
 0x3ad   : > { %v854_v27 = vsel %vm853_vm4, %v849_v5, inf  ;;  %v3088_v5 = vld [vmem:[#allocation25_spill] sm:$0xff]  ;;  %v3089_v48 = vld [vmem:[#allocation26_spill] sm:$0xff] }
 0x3ae   : > { %855 = vmin.xlane.f32.xlu1 %v854_v27  ;;  %v859_v26 = vshll.u32 %v858_v53, 16  ;;  %v3095_v27 = vld [vmem:[#allocation32_spill] sm:$0xff]  ;;  %v3096_v53 = vld [vmem:[#allocation33_spill] sm:$0xff] }
 0x43b   : > { %v856_v47 = vpop.xlane.xlu1 %855 }
 0x43c   : > { %v857_v42 = vcvt.f32.s32 %v856_v47  ;;  %v3097_v47 = vld [vmem:[#allocation35_spill] sm:$0xff] }
 0x43e   : > { %v860_v11 = vadd.s32 %v859_v26, %v857_v42  ;;  %v3091_v26 = vld [vmem:[#allocation28_spill] sm:$0xff] }
 0x43f   : > { %v3098_v42 = vld [vmem:[#allocation36_spill] sm:$0xff] }
 0x440   : > { %vm861_vm5 = vcmp.eq.s32.totalorder %v3076_v6, %v860_v11  ;;  %v3090_v11 = vld [vmem:[#allocation27_spill] sm:$0xff] }
 0x441   : > { %v1573_v60 = vsel %vm861_vm5, 1.0, %v3062_v59 }
 0x442   : > { %v864_v38 = vpack.c.bf16 %v1573_v60, %v1573_v60  ;;  %v3099_v60 = vld [vmem:[#allocation39_spill] sm:$0xff] }
 0x444   : > { %v871_v63 = vsel %vm2635_vm2, %v2538_v62, %v864_v38  ;;  %v3087_v62 = vld [vmem:[#allocation24_spill] sm:$0xff] }
 0x445   : > { %907 = vmatmul.mubr.bf16.vlgmr.msra.gmra.mrb[4].mxu1 %v871_v63  ;;  %948 = vmatmul.mubr.bf16.vlgmr.msra.gmra.mrb[8].mxu0 %v871_v63  ;;  %v3100_v38 = vld [vmem:[#allocation40_spill] sm:$0xff]  ;;  %v3101_v63 = vld [vmem:[#allocation43_spill] sm:$0xff] }
 0x446   : > { %1660 = vmatpush3.bf16.msra.mxu1 %v2581_v49  ;;  %1675 = vmatprep.mubr.msk.bf16.mxu1 %vm2160_vm1, %v3062_v59 }
 0x447   : > { %1661 = vmatprep.subr.bf16.mxu1 %v3062_v59  ;;  %1046 = vmatpush1.bf16.msra.mxu0 %v2349_v7  ;;  %v3079_v7 = vld [vmem:[#allocation19_spill] sm:$0xff] }
 0x448   : > { %1047 = vmatprep.subr.bf16.mxu0 %v2352_v8  ;;  %v3080_v8 = vld [vmem:[#allocation48_spill] sm:$0xff] }
 0x44a   : > { %1662 = vmatpush3.bf16.msra.mxu1 %v2585_v56 }
 0x44b   : > { %1663 = vmatprep.subr.bf16.mxu1 %v3062_v59  ;;  %1048 = vmatpush1.bf16.msra.mxu0 %v2355_v9  ;;  %v3081_v9 = vld [vmem:[#allocation20_spill] sm:$0xff] }
 0x44c   : > { %1049 = vmatprep.subr.bf16.mxu0 %v2358_v10  ;;  %v3082_v10 = vld [vmem:[#allocation21_spill] sm:$0xff] }
 0x44e   : > { %1664 = vmatpush3.bf16.msra.mxu1 %v2589_v61 }
 0x44f   : > { %1665 = vmatprep.subr.bf16.mxu1 %v3062_v59  ;;  %1050 = vmatpush1.bf16.msra.mxu0 %v2365_v13  ;;  %v3083_v13 = vld [vmem:[#allocation49_spill] sm:$0xff] }
 0x450   : > { %1051 = vmatprep.subr.bf16.mxu0 %v2369_v14  ;;  %v3084_v14 = vld [vmem:[#allocation17_spill] sm:$0xff] }
 0x452   : > { %1666 = vmatpush3.bf16.msra.mxu1 %v2593_v2 }
 0x453   : > { %1667 = vmatprep.subr.bf16.mxu1 %v3062_v59  ;;  %1052 = vmatpush1.bf16.msra.mxu0 %v2378_v17  ;;  %v3085_v17 = vld [vmem:[#allocation22_spill] sm:$0xff] }
 0x454   : > { %1053 = vmatprep.subr.bf16.mxu0 %v2380_v18  ;;  %v3086_v18 = vld [vmem:[#allocation23_spill] sm:$0xff] }
 0x456   : > { %1668 = vmatpush3.bf16.msra.mxu1 %v2597_v4 }
 0x457   : > { %1669 = vmatprep.subr.bf16.mxu1 %v3062_v59  ;;  %1054 = vmatpush1.bf16.msra.mxu0 %v2392_v22 }
 0x458   : > { %1055 = vmatprep.subr.bf16.mxu0 %v2395_v23 }
 0x45a   : > { %1670 = vmatpush3.bf16.msra.mxu1 %v3077_v1 }
 0x45b   : > { %1671 = vmatprep.subr.bf16.mxu1 %v3062_v59  ;;  %1056 = vmatpush1.bf16.msra.mxu0 %v3078_v3 }
 0x45c   : > { %1057 = vmatprep.subr.bf16.mxu0 %v3079_v7 }
 0x45e   : > { %1672 = vmatpush3.bf16.msra.mxu1 %v3080_v8 }
 0x45f   : > { %1673 = vmatprep.subr.bf16.mxu1 %v3062_v59  ;;  %1058 = vmatpush1.bf16.msra.mxu0 %v3081_v9 }
 0x460   : > { %1059 = vmatprep.subr.bf16.mxu0 %v3082_v10 }
 0x462   : > { %1674 = vmatpush3.bf16.msra.mxu1 %v3083_v13 }
 0x463   : > { %1086 = vmatprep.subr.bf16.mxu1 %v3084_v14  ;;  %1060 = vmatpush1.bf16.msra.mxu0 %v3085_v17 }
 0x464   : > { %1061 = vmatprep.subr.bf16.mxu0 %v3086_v18 }
 0x467   : > { %1062 = vmatpush1.bf16.msra.mxu0 %v3087_v62 }
 0x468   : > { %1063 = vmatprep.subr.bf16.mxu0 %v3088_v5 }
 0x46b   : > { %1064 = vmatpush1.bf16.msra.mxu0 %v3089_v48 }
 0x46c   : > { %1065 = vmatprep.subr.bf16.mxu0 %v3090_v11 }
 0x46f   : > { %1066 = vmatpush1.bf16.msra.mxu0 %v3091_v26 }
 0x470   : > { %1067 = vmatprep.subr.bf16.mxu0 %v3092_v39  ;;  %v3102_v39 = vld [vmem:[#allocation50_spill] sm:$0xff] }
 0x473   : > { %1068 = vmatpush1.bf16.msra.mxu0 %v3093_v31 }
 0x474   : > { %1069 = vmatprep.subr.bf16.mxu0 %v3094_v30 }
 0x477   : > { %1070 = vmatpush1.bf16.msra.mxu0 %v3095_v27 }
 0x478   : > { %1071 = vmatprep.subr.bf16.mxu0 %v3096_v53 }
 0x47b   : > { %1072 = vmatpush1.bf16.msra.mxu0 %v3097_v47 }
 0x47c   : > { %1073 = vmatprep.subr.bf16.mxu0 %v3098_v42 }
 0x47f   : > { %1074 = vmatpush1.bf16.msra.mxu0 %v3099_v60 }
 0x480   : > { %1075 = vmatprep.subr.bf16.mxu0 %v3100_v38  ;;  %v3103_v38 = vld [vmem:[#allocation51_spill] sm:$0xff] }
 0x483   : > { %1076 = vmatpush1.bf16.msra.mxu0 %v3101_v63 }
 0x484   : > { %1679 = vmatprep.subr.bf16.mxu0 %v3062_v59 }
 0x518   : > { %v908_v14 = vpop.f32.mrb[4].mxu1  ;;  %v949_v31 = vpop.f32.mrb[8].mxu0 }
 0x519   : > { %v909_v30 = vadd.f32 %v908_v14, %v3102_v39  ;;  %v910_v26 = vpop.f32.mrb[5].mxu1  ;;  %v951_v27 = vpop.f32.mrb[9].mxu0  ;;  %v950_v18 = vadd.f32 %v949_v31, %v2624_v0 }
 0x51a   : > { %v911_v53 = vadd.f32 %v910_v26, %v2617_v51  ;;  %v912_v11 = vpop.f32.mrb[6].mxu1  ;;  %v953_v47 = vpop.f32.mrb[10].mxu0  ;;  %v952_v63 = vadd.f32 %v951_v27, %v3103_v38 }
 0x51b   : > { %v1574_v48 = vmul.f32 -1.442695, %v909_v30  ;;  %v913_v42 = vpop.f32.mrb[7].mxu1  ;;  %v954_v5 = vpop.f32.mrb[11].mxu0 }
 0x51c   : > { %v1575_v60 = vmul.f32 -1.442695, %v911_v53  ;;  %v1576_v62 = vmul.f32 -1.442695, %v952_v63 }
 0x51d   : > { %1919 = vpow2.f32 %v1574_v48  ;;  %v870_v48 = vsel %vm2635_vm2, %v2627_v43, %v2630_v57 }
 0x51e   : > { %1921 = vpow2.f32 %v1575_v60 }
 0x51f   : > { %1923 = vpow2.f32 %v1576_v62 }
 0x520   : > { %1925 = vtanh.f32 %v950_v18 }
 0x527   : > { %v1920_v17 = vpop.eup %1919 }
 0x528   : > { %v1922_v13 = vpop.eup %1921  ;;  %v959_v14 = vadd.f32 1.0, %v1920_v17 }
 0x529   : > { %v965_v39 = vadd.f32 1.0, %v1922_v13  ;;  %v1924_v11 = vpop.eup %1923 }
 0x52a   : > { %1927 = vrcp.f32 %v959_v14  ;;  %v1926_v26 = vpop.eup %1925  ;;  %v972_v53 = vadd.f32 1.0, %v1924_v11  ;;  %v2161_v11 = vmov 1.0|1.0  }
 0x52b   : > { %1929 = vrcp.f32 %v965_v39 }
 0x52c   : > { %1931 = vrcp.f32 %v972_v53  ;;  %v1973_v53 = vld [vmem:[#allocation5 + $0x64] ss:$16 sps:$4 sm:$0xff]  }
 0x534   : > { %v1928_v30 = vpop.eup %1927 }
 0x535   : > { %v1930_v5 = vpop.eup %1929  ;;  %v976_v27 = vmul.f32 %v1928_v30, %v1926_v26  ;;  %v1968_v26 = vld [vmem:[#allocation5] ss:$16 sps:$4 sm:$0xff]   ;;  %v1969_v30 = vld [vmem:[#allocation5 + $0x24] ss:$16 sps:$4 sm:$0xff]  }
 0x536   : > { %v975_v31 = vmul.f32 %v1930_v5, %v870_v48  ;;  %v1932_v13 = vpop.eup %1931  ;;  %v1970_v5 = vld [vmem:[#allocation5 + $0x20] ss:$16 sps:$4 sm:$0xff]   ;;  %v1971_v48 = vld [vmem:[#allocation5 + $0x44] ss:$16 sps:$4 sm:$0xff]  }
 0x538   : > { %v2748_v47 = vadd.f32 %v976_v27, %v975_v31  ;;  %v1972_v27 = vld [vmem:[#allocation5 + $0x40] ss:$16 sps:$4 sm:$0xff]  }
 0x539   : > { %v1974_v31 = vld [vmem:[#allocation5 + $0x60] ss:$16 sps:$4 sm:$0xff]  }
 0x53a   : > { %1933 = vtanh.f32 %v2748_v47 }
 0x544   : > { %v1934_v17 = vpop.eup %1933 }
 0x545   : > { %v979_v18 = vmul.f32 %v1934_v17, %v1932_v13  ;;  %v1975_v13 = vld [vmem:[#allocation5 + $0x84] ss:$16 sps:$4 sm:$0xff]  }
 0x546   : > { %v3111_v17 = vld [vmem:[#allocation49_spill] sm:$0xff] }
 0x547   : > { %v980_v62 = vpack.c.bf16 %v979_v18, %v979_v18  ;;  %v3113_v18 = vld [vmem:[#allocation23_spill] sm:$0xff] }
 0x549   : > { %1676 = vmatmul.mubr.bf16.vlgmr.msra.gmra.mrb[8].mxu1 %v980_v62  ;;  %1077 = vmatprep.mubr.bf16.mxu0 %v980_v62 }
 0x54a   : > { %1118 = vmatprep.mubr.bf16.mxu1 %v980_v62  ;;  %1087 = vmatpush1.bf16.msra.mxu1 %v2362_v12  ;;  %v3104_v12 = vld [vmem:[#allocation38_spill] sm:$0xff]  ;;  %v3114_v62 = vld [vmem:[#allocation24_spill] sm:$0xff] }
 0x54b   : > { %1088 = vmatprep.subr.bf16.mxu1 %v2372_v15  ;;  %v3105_v15 = vld [vmem:[#allocation41_spill] sm:$0xff] }
 0x54e   : > { %1089 = vmatpush1.bf16.msra.mxu1 %v2374_v16  ;;  %v3106_v16 = vld [vmem:[#allocation42_spill] sm:$0xff] }
 0x54f   : > { %1090 = vmatprep.subr.bf16.mxu1 %v2382_v19  ;;  %v3107_v19 = vld [vmem:[#allocation44_spill] sm:$0xff] }
 0x552   : > { %1091 = vmatpush1.bf16.msra.mxu1 %v2386_v20  ;;  %v3108_v20 = vld [vmem:[#allocation45_spill] sm:$0xff] }
 0x553   : > { %1092 = vmatprep.subr.bf16.mxu1 %v2389_v21  ;;  %v3109_v21 = vld [vmem:[#allocation46_spill] sm:$0xff] }
 0x556   : > { %1093 = vmatpush1.bf16.msra.mxu1 %v2398_v24  ;;  %v1967_v24 = vld [vmem:[#allocation5 + $0x4] ss:$16 sps:$4 sm:$0xff]  }
 0x557   : > { %1094 = vmatprep.subr.bf16.mxu1 %v2401_v25 }
 0x55a   : > { %1095 = vmatpush1.bf16.msra.mxu1 %v2410_v28  ;;  %v3110_v28 = vld [vmem:[#allocation34_spill] sm:$0xff] }
 0x55b   : > { %1096 = vmatprep.subr.bf16.mxu1 %v2413_v29 }
 0x55e   : > { %1097 = vmatpush1.bf16.msra.mxu1 %v2422_v32 }
 0x55f   : > { %1098 = vmatprep.subr.bf16.mxu1 %v2425_v33 }
 0x562   : > { %1099 = vmatpush1.bf16.msra.mxu1 %v2434_v36 }
 0x563   : > { %1100 = vmatprep.subr.bf16.mxu1 %v2437_v37 }
 0x566   : > { %1101 = vmatpush1.bf16.msra.mxu1 %v2446_v40 }
 0x567   : > { %1102 = vmatprep.subr.bf16.mxu1 %v2449_v41 }
 0x56a   : > { %1103 = vmatpush1.bf16.msra.mxu1 %v2458_v44 }
 0x56b   : > { %1104 = vmatprep.subr.bf16.mxu1 %v2461_v45 }
 0x56e   : > { %1105 = vmatpush1.bf16.msra.mxu1 %v2474_v50 }
 0x56f   : > { %1106 = vmatprep.subr.bf16.mxu1 %v2479_v52 }
 0x572   : > { %1107 = vmatpush1.bf16.msra.mxu1 %v2484_v54 }
 0x573   : > { %1108 = vmatprep.subr.bf16.mxu1 %v2486_v55 }
 0x576   : > { %1109 = vmatpush1.bf16.msra.mxu1 %v2495_v58 }
 0x577   : > { %1110 = vmatprep.subr.bf16.mxu1 %v3071_v46 }
 0x57a   : > { %1111 = vmatpush1.bf16.msra.mxu1 %v3072_v35 }
 0x57b   : > { %1112 = vmatprep.subr.bf16.mxu1 %v3104_v12 }
 0x57e   : > { %1113 = vmatpush1.bf16.msra.mxu1 %v3105_v15 }
 0x57f   : > { %1114 = vmatprep.subr.bf16.mxu1 %v3106_v16 }
 0x582   : > { %1115 = vmatpush1.bf16.msra.mxu1 %v3107_v19 }
 0x583   : > { %1116 = vmatprep.subr.bf16.mxu1 %v3108_v20 }
 0x586   : > { %1117 = vmatpush1.bf16.msra.mxu1 %v3109_v21 }
 0x587   : > { %1216 = vmatprep.subr.bf16.mxu1 %v1967_v24  ;;  %v3117_v24 = vld [vmem:[#allocation27_spill] sm:$0xff] }
 0x61c   : > { %v1015_v25 = vpop.f32.mrb[8].mxu1 }
 0x61d   : > { %v1016_v29 = vadd.f32 %v3110_v28, %v1015_v25  ;;  %v1677_v32 = vpop.f32.mrb[9].mxu1  ;;  %v3118_v25 = vld [vmem:[#allocation28_spill] sm:$0xff] }
 0x61e   : > { %v1018_v33 = vpop.f32.mrb[10].mxu1  ;;  %v3122_v32 = vld [vmem:[#allocation32_spill] sm:$0xff] }
 0x61f   : > { %1578 = vst [vmem:[%s2341_s27 + $0x8] sm:$0xff] %v1016_v29  ;;  %1021 = vmax.xlane.f32.xlu1 %v1016_v29  ;;  %v1678_v36 = vpop.f32.mrb[11].mxu1  ;;  %v3123_v33 = vld [vmem:[#allocation33_spill] sm:$0xff] }
 0x620   : > { %v3124_v36 = vld [vmem:[#allocation35_spill] sm:$0xff] }
 0x6ac   : > { %v1022_v37 = vpop.xlane.xlu1 %1021 }
 0x6ad   : > { %vm1023_vm6 = vcmp.eq.f32.partialorder %v1016_v29, %v1022_v37  ;;  %v3121_v29 = vld [vmem:[#allocation31_spill] sm:$0xff]  ;;  %v3125_v37 = vld [vmem:[#allocation36_spill] sm:$0xff] }
 0x6ae   : > { %v1024_v40 = vsel %vm1023_vm6, %v3076_v6, 128 }
 0x6af   : > { %v1026_v41 = vshra.s32 %v1024_v40, 16  ;;  %v1025_v45 = vand.u32 65535, %v1024_v40  ;;  %v3126_v40 = vld [vmem:[#allocation39_spill] sm:$0xff] }
 0x6b1   : > { %v1028_v44 = vcvt.s32.f32 %v1026_v41  ;;  %v1027_v43 = vcvt.s32.f32 %v1025_v45  ;;  %v3127_v41 = vld [vmem:[#allocation40_spill] sm:$0xff] }
 0x6b3   : > { %1029 = vmin.xlane.f32.xlu0 %v1028_v44 }
 0x740   : > { %v1030_v57 = vpop.xlane.xlu0 %1029 }
 0x741   : > { %vm1031_vm7 = vcmp.eq.f32.partialorder %v1028_v44, %v1030_v57  ;;  %v1036_v39 = vcvt.f32.s32 %v1030_v57  ;;  %v3128_v44 = vld [vmem:[#allocation43_spill] sm:$0xff]  ;;  %v3129_v57 = vld [vmem:[#allocation50_spill] sm:$0xff] }
 0x742   : > { %v1032_v34 = vsel %vm1031_vm7, %v1027_v43, inf }
 0x743   : > { %1033 = vmin.xlane.f32.xlu1 %v1032_v34  ;;  %v1037_v60 = vshll.u32 %v1036_v39, 16 }
 0x7d0   : > { %v1034_v42 = vpop.xlane.xlu1 %1033 }
 0x7d1   : > { %v1035_v63 = vcvt.f32.s32 %v1034_v42 }
 0x7d3   : > { %v1038_v14 = vadd.s32 %v1037_v60, %v1035_v63 }
 0x7d5   : > { %vm1039_vm8 = vcmp.eq.s32.totalorder %v3076_v6, %v1038_v14 }
 0x7d6   : > { %vm1579_vm9 = vmpackc.low %vm1039_vm8, %vm1039_vm8 }
 0x7d7   : > { %1580 = vmatmul.mubr.msk.bf16.vlgmr.msra.gmra.mrb[12].mxu0 %vm1579_vm9, %v2161_v11  ;;  %1582 = vmatmul.mubr.msk.bf16.vlgmr.msra.gmra.mrb[12].mxu1 %vm1579_vm9, %v2161_v11 }
 0x7d8   : > { %1680 = vmatpush3.bf16.msra.mxu0 %v2581_v49  ;;  %1695 = vmatprep.mubr.msk.bf16.mxu0 %vm2160_vm1, %v3062_v59 }
 0x7d9   : > { %1681 = vmatprep.subr.bf16.mxu0 %v3062_v59  ;;  %1217 = vmatpush1.bf16.msra.mxu1 %v1968_v26 }
 0x7da   : > { %1218 = vmatprep.subr.bf16.mxu1 %v1969_v30 }
 0x7dc   : > { %1682 = vmatpush3.bf16.msra.mxu0 %v2585_v56 }
 0x7dd   : > { %1683 = vmatprep.subr.bf16.mxu0 %v3062_v59  ;;  %1219 = vmatpush1.bf16.msra.mxu1 %v1970_v5 }
 0x7de   : > { %1220 = vmatprep.subr.bf16.mxu1 %v1971_v48 }
 0x7e0   : > { %1684 = vmatpush3.bf16.msra.mxu0 %v2589_v61 }
 0x7e1   : > { %1685 = vmatprep.subr.bf16.mxu0 %v3062_v59  ;;  %1221 = vmatpush1.bf16.msra.mxu1 %v1972_v27 }
 0x7e2   : > { %1222 = vmatprep.subr.bf16.mxu1 %v1973_v53 }
 0x7e4   : > { %1686 = vmatpush3.bf16.msra.mxu0 %v2593_v2 }
 0x7e5   : > { %1687 = vmatprep.subr.bf16.mxu0 %v3062_v59  ;;  %1223 = vmatpush1.bf16.msra.mxu1 %v1974_v31 }
 0x7e6   : > { %1224 = vmatprep.subr.bf16.mxu1 %v1975_v13 }
 0x7e8   : > { %1688 = vmatpush3.bf16.msra.mxu0 %v2597_v4 }
 0x7e9   : > { %1689 = vmatprep.subr.bf16.mxu0 %v3062_v59  ;;  %1225 = vmatpush1.bf16.msra.mxu1 %v2392_v22  ;;  %v1976_v22 = vld [vmem:[#allocation5 + $0xc] ss:$16 sps:$4 sm:$0xff]  }
 0x7ea   : > { %1226 = vmatprep.subr.bf16.mxu1 %v2395_v23  ;;  %v3112_v23 = vld [vmem:[#allocation22_spill] sm:$0xff] }
 0x7ec   : > { %1690 = vmatpush3.bf16.msra.mxu0 %v3077_v1 }
 0x7ed   : > { %1691 = vmatprep.subr.bf16.mxu0 %v3062_v59  ;;  %1227 = vmatpush1.bf16.msra.mxu1 %v3078_v3  ;;  %v3115_v3 = vld [vmem:[#allocation25_spill] sm:$0xff] }
 0x7ee   : > { %1228 = vmatprep.subr.bf16.mxu1 %v3079_v7  ;;  %v3116_v7 = vld [vmem:[#allocation26_spill] sm:$0xff] }
 0x7f0   : > { %1692 = vmatpush3.bf16.msra.mxu0 %v3080_v8 }
 0x7f1   : > { %1693 = vmatprep.subr.bf16.mxu0 %v3062_v59  ;;  %1229 = vmatpush1.bf16.msra.mxu1 %v3081_v9  ;;  %v3119_v9 = vld [vmem:[#allocation29_spill] sm:$0xff] }
 0x7f2   : > { %1230 = vmatprep.subr.bf16.mxu1 %v3082_v10  ;;  %v3120_v10 = vld [vmem:[#allocation30_spill] sm:$0xff] }
 0x7f4   : > { %1694 = vmatpush3.bf16.msra.mxu0 %v3111_v17 }
 0x7f5   : > { %1257 = vmatprep.subr.bf16.mxu0 %v1976_v22  ;;  %1231 = vmatpush1.bf16.msra.mxu1 %v3112_v23 }
 0x7f6   : > { %1232 = vmatprep.subr.bf16.mxu1 %v3113_v18 }
 0x7f9   : > { %1233 = vmatpush1.bf16.msra.mxu1 %v3114_v62 }
 0x7fa   : > { %1234 = vmatprep.subr.bf16.mxu1 %v3115_v3 }
 0x7fd   : > { %1235 = vmatpush1.bf16.msra.mxu1 %v3116_v7 }
 0x7fe   : > { %1236 = vmatprep.subr.bf16.mxu1 %v3117_v24 }
 0x801   : > { %1237 = vmatpush1.bf16.msra.mxu1 %v3118_v25 }
 0x802   : > { %1238 = vmatprep.subr.bf16.mxu1 %v3119_v9 }
 0x805   : > { %1239 = vmatpush1.bf16.msra.mxu1 %v3120_v10 }
 0x806   : > { %1240 = vmatprep.subr.bf16.mxu1 %v3121_v29 }
 0x809   : > { %1241 = vmatpush1.bf16.msra.mxu1 %v3122_v32 }
 0x80a   : > { %1242 = vmatprep.subr.bf16.mxu1 %v3123_v33 }
 0x80d   : > { %1243 = vmatpush1.bf16.msra.mxu1 %v3124_v36 }
 0x80e   : > { %1244 = vmatprep.subr.bf16.mxu1 %v3125_v37 }
 0x811   : > { %1245 = vmatpush1.bf16.msra.mxu1 %v3126_v40  ;;  %v1977_v40 = vld [vmem:[#allocation5 + $0x8] ss:$16 sps:$4 sm:$0xff]  }
 0x812   : > { %1246 = vmatprep.subr.bf16.mxu1 %v3127_v41  ;;  %v1978_v41 = vld [vmem:[#allocation5 + $0x2c] ss:$16 sps:$4 sm:$0xff]  }
 0x815   : > { %1247 = vmatpush1.bf16.msra.mxu1 %v3128_v44  ;;  %v1979_v44 = vld [vmem:[#allocation5 + $0x28] ss:$16 sps:$4 sm:$0xff]  }
 0x816   : > { %1699 = vmatprep.subr.bf16.mxu1 %v3062_v59 }
 0x8aa   : > { %v1079_v45 = vpop.f32.mrb[12].mxu0  ;;  %v1120_v43 = vpop.f32.mrb[12].mxu1 }
 0x8ab   : > { %v1080_v34 = vadd.f32 %v1079_v45, %v3129_v57  ;;  %v1081_v39 = vpop.f32.mrb[13].mxu0  ;;  %v1122_v42 = vpop.f32.mrb[13].mxu1  ;;  %v1121_v31 = vadd.f32 %v1120_v43, %v2624_v0  ;;  %v1980_v45 = vld [vmem:[#allocation5 + $0x4c] ss:$16 sps:$4 sm:$0xff]  }
 0x8ac   : > { %v1082_v60 = vadd.f32 %v1081_v39, %v2617_v51  ;;  %v1083_v63 = vpop.f32.mrb[14].mxu0  ;;  %v1124_v14 = vpop.f32.mrb[14].mxu1  ;;  %v1123_v27 = vadd.f32 %v1122_v42, %v3103_v38  ;;  %v1982_v43 = vld [vmem:[#allocation5 + $0x6c] ss:$16 sps:$4 sm:$0xff]   ;;  %v1985_v42 = vld [vmem:[#allocation5 + $0x88] ss:$16 sps:$4 sm:$0xff]  }
 0x8ad   : > { %v1583_v26 = vmul.f32 -1.442695, %v1080_v34  ;;  %v1084_v30 = vpop.f32.mrb[15].mxu0  ;;  %v1125_v5 = vpop.f32.mrb[15].mxu1  ;;  %v1983_v34 = vld [vmem:[#allocation5 + $0x68] ss:$16 sps:$4 sm:$0xff]  }
 0x8ae   : > { %v1584_v48 = vmul.f32 -1.442695, %v1082_v60  ;;  %v1585_v53 = vmul.f32 -1.442695, %v1123_v27  ;;  %v1984_v39 = vld [vmem:[#allocation5 + $0x8c] ss:$16 sps:$4 sm:$0xff]  }
 0x8af   : > { %1935 = vpow2.f32 %v1583_v26  ;;  %v1986_v60 = vld [vmem:[#allocation5 + $0xac] ss:$16 sps:$4 sm:$0xff]   ;;  %v1987_v63 = vld [vmem:[#allocation5 + $0xa8] ss:$16 sps:$4 sm:$0xff]  }
 0x8b0   : > { %1937 = vpow2.f32 %v1584_v48  ;;  %v1988_v14 = vld [vmem:[#allocation5 + $0xcc] ss:$16 sps:$4 sm:$0xff]   ;;  %v1989_v26 = vld [vmem:[#allocation5 + $0xc8] ss:$16 sps:$4 sm:$0xff]  }
 0x8b1   : > { %1939 = vpow2.f32 %v1585_v53  ;;  %v1990_v30 = vld [vmem:[#allocation5 + $0xec] ss:$16 sps:$4 sm:$0xff]   ;;  %v1991_v5 = vld [vmem:[#allocation5 + $0xe8] ss:$16 sps:$4 sm:$0xff]  }
 0x8b2   : > { %1941 = vtanh.f32 %v1121_v31  ;;  %v1992_v48 = vld [vmem:[#allocation5 + $0x10c] ss:$16 sps:$4 sm:$0xff]   ;;  %v1993_v27 = vld [vmem:[#allocation5 + $0x108] ss:$16 sps:$4 sm:$0xff]  }
 0x8b3   : > { %v1994_v53 = vld [vmem:[#allocation5 + $0x12c] ss:$16 sps:$4 sm:$0xff]  }
 0x8b9   : > { %v1936_v13 = vpop.eup %1935 }
 0x8ba   : > { %v1938_v22 = vpop.eup %1937  ;;  %v1130_v23 = vadd.f32 1.0, %v1936_v13 }
 0x8bb   : > { %v1136_v18 = vadd.f32 1.0, %v1938_v22  ;;  %v1940_v62 = vpop.eup %1939 }
 0x8bc   : > { %1943 = vrcp.f32 %v1130_v23  ;;  %v1942_v3 = vpop.eup %1941  ;;  %v1143_v9 = vadd.f32 1.0, %v1940_v62 }
 0x8bd   : > { %1945 = vrcp.f32 %v1136_v18 }
 0x8be   : > { %1947 = vrcp.f32 %v1143_v9 }
 0x8c6   : > { %v1944_v7 = vpop.eup %1943 }
 0x8c7   : > { %v1946_v24 = vpop.eup %1945  ;;  %v1147_v25 = vmul.f32 %v1944_v7, %v1942_v3 }
 0x8c8   : > { %v1146_v10 = vmul.f32 %v1946_v24, %v2748_v47  ;;  %v1948_v32 = vpop.eup %1947  ;;  %v1981_v47 = vld [vmem:[#allocation5 + $0x48] ss:$16 sps:$4 sm:$0xff]  }
 0x8ca   : > { %v2834_v29 = vadd.f32 %v1147_v25, %v1146_v10 }
 0x8cc   : > { %1949 = vtanh.f32 %v2834_v29 }
 0x8d6   : > { %v1950_v33 = vpop.eup %1949 }
 0x8d7   : > { %v1150_v36 = vmul.f32 %v1950_v33, %v1948_v32 }
 0x8d9   : > { %v1151_v37 = vpack.c.bf16 %v1150_v36, %v1150_v36 }
 0x8db   : > { %1696 = vmatmul.mubr.bf16.vlgmr.msra.gmra.mrb[16].mxu0 %v1151_v37  ;;  %1248 = vmatprep.mubr.bf16.mxu1 %v1151_v37 }
 0x8dc   : > { %1289 = vmatprep.mubr.bf16.mxu0 %v1151_v37  ;;  %1258 = vmatpush1.bf16.msra.mxu0 %v1977_v40 }
 0x8dd   : > { %1259 = vmatprep.subr.bf16.mxu0 %v1978_v41 }
 0x8e0   : > { %1260 = vmatpush1.bf16.msra.mxu0 %v1979_v44 }
 0x8e1   : > { %1261 = vmatprep.subr.bf16.mxu0 %v1980_v45 }
 0x8e4   : > { %1262 = vmatpush1.bf16.msra.mxu0 %v1981_v47 }
 0x8e5   : > { %1263 = vmatprep.subr.bf16.mxu0 %v1982_v43 }
 0x8e8   : > { %1264 = vmatpush1.bf16.msra.mxu0 %v1983_v34 }
 0x8e9   : > { %1265 = vmatprep.subr.bf16.mxu0 %v1984_v39 }
 0x8ec   : > { %1266 = vmatpush1.bf16.msra.mxu0 %v1985_v42 }
 0x8ed   : > { %1267 = vmatprep.subr.bf16.mxu0 %v1986_v60 }
 0x8f0   : > { %1268 = vmatpush1.bf16.msra.mxu0 %v1987_v63 }
 0x8f1   : > { %1269 = vmatprep.subr.bf16.mxu0 %v1988_v14 }
 0x8f4   : > { %1270 = vmatpush1.bf16.msra.mxu0 %v1989_v26 }
 0x8f5   : > { %1271 = vmatprep.subr.bf16.mxu0 %v1990_v30 }
 0x8f8   : > { %1272 = vmatpush1.bf16.msra.mxu0 %v1991_v5 }
 0x8f9   : > { %1273 = vmatprep.subr.bf16.mxu0 %v1992_v48 }
 0x8fc   : > { %1274 = vmatpush1.bf16.msra.mxu0 %v1993_v27 }
 0x8fd   : > { %1275 = vmatprep.subr.bf16.mxu0 %v1994_v53 }
 0x900   : > { %1276 = vmatpush1.bf16.msra.mxu0 %v2474_v50 }
 0x901   : > { %1277 = vmatprep.subr.bf16.mxu0 %v2479_v52 }
 0x904   : > { %1278 = vmatpush1.bf16.msra.mxu0 %v2484_v54 }
 0x905   : > { %1279 = vmatprep.subr.bf16.mxu0 %v2486_v55 }
 0x908   : > { %1280 = vmatpush1.bf16.msra.mxu0 %v2495_v58 }
 0x909   : > { %1281 = vmatprep.subr.bf16.mxu0 %v3071_v46 }
 0x90c   : > { %1282 = vmatpush1.bf16.msra.mxu0 %v3072_v35 }
 0x90d   : > { %1283 = vmatprep.subr.bf16.mxu0 %v3104_v12 }
 0x910   : > { %1284 = vmatpush1.bf16.msra.mxu0 %v3105_v15 }
 0x911   : > { %1285 = vmatprep.subr.bf16.mxu0 %v3106_v16 }
 0x914   : > { %1286 = vmatpush1.bf16.msra.mxu0 %v3107_v19 }
 0x915   : > { %1287 = vmatprep.subr.bf16.mxu0 %v3108_v20 }
 0x918   : > { %1288 = vmatpush1.bf16.msra.mxu0 %v3109_v21 }
 0x9ae   : > { %v1186_v50 = vpop.f32.mrb[16].mxu0 }
 0x9af   : > { %v1187_v52 = vadd.f32 %v3110_v28, %v1186_v50  ;;  %v1697_v54 = vpop.f32.mrb[17].mxu0 }
 0x9b0   : > { %v1189_v55 = vpop.f32.mrb[18].mxu0 }
 0x9b1   : > { %1587 = vst [vmem:[%s2341_s27 + $0x10] sm:$0xff] %v1187_v52  ;;  %1192 = vmax.xlane.f32.xlu0 %v1187_v52  ;;  %v1698_v58 = vpop.f32.mrb[19].mxu0 }
 0xa3e   : > { %v1193_v46 = vpop.xlane.xlu0 %1192 }
 0xa3f   : > { %vm1194_vm10 = vcmp.eq.f32.partialorder %v1187_v52, %v1193_v46 }
 0xa40   : > { %v1195_v35 = vsel %vm1194_vm10, %v3076_v6, 128 }
 0xa41   : > { %v1197_v12 = vshra.s32 %v1195_v35, 16  ;;  %v1196_v16 = vand.u32 65535, %v1195_v35 }
 0xa43   : > { %v1199_v15 = vcvt.s32.f32 %v1197_v12  ;;  %v1198_v19 = vcvt.s32.f32 %v1196_v16 }
 0xa45   : > { %1200 = vmin.xlane.f32.xlu1 %v1199_v15 }
 0xad2   : > { %v1201_v20 = vpop.xlane.xlu1 %1200 }
 0xad3   : > { %vm1202_vm11 = vcmp.eq.f32.partialorder %v1199_v15, %v1201_v20  ;;  %v1207_v31 = vcvt.f32.s32 %v1201_v20 }
 0xad4   : > { %v1203_v21 = vsel %vm1202_vm11, %v1198_v19, inf }
 0xad5   : > { %1204 = vmin.xlane.f32.xlu0 %v1203_v21  ;;  %v1208_v22 = vshll.u32 %v1207_v31, 16 }
 0xb62   : > { %v1205_v13 = vpop.xlane.xlu0 %1204 }
 0xb63   : > { %v1206_v23 = vcvt.f32.s32 %v1205_v13 }
 0xb65   : > { %v1209_v18 = vadd.s32 %v1208_v22, %v1206_v23 }
 0xb67   : > { %vm1210_vm12 = vcmp.eq.s32.totalorder %v3076_v6, %v1209_v18 }
 0xb68   : > { %vm1588_vm13 = vmpackc.low %vm1210_vm12, %vm1210_vm12 }
 0xb69   : > { %1589 = vmatmul.mubr.msk.bf16.vlgmr.msra.gmra.mrb[16].mxu1 %vm1588_vm13, %v2161_v11  ;;  %1591 = vmatmul.mubr.msk.bf16.vlgmr.msra.gmra.mrb[20].mxu0 %vm1588_vm13, %v2161_v11 }
 0xb6a   : > { %1700 = vmatpush3.bf16.msra.mxu1 %v2581_v49  ;;  %1715 = vmatprep.mubr.msk.bf16.mxu1 %vm2160_vm1, %v3062_v59 }
 0xb6b   : > { %1701 = vmatprep.subr.bf16.mxu1 %v3062_v59 }
 0xb6e   : > { %1702 = vmatpush3.bf16.msra.mxu1 %v2585_v56 }
 0xb6f   : > { %1703 = vmatprep.subr.bf16.mxu1 %v3062_v59 }
 0xb72   : > { %1704 = vmatpush3.bf16.msra.mxu1 %v2589_v61 }
 0xb73   : > { %1705 = vmatprep.subr.bf16.mxu1 %v3062_v59 }
 0xb76   : > { %1706 = vmatpush3.bf16.msra.mxu1 %v2593_v2 }
 0xb77   : > { %1707 = vmatprep.subr.bf16.mxu1 %v3062_v59 }
 0xb7a   : > { %1708 = vmatpush3.bf16.msra.mxu1 %v2597_v4 }
 0xb7b   : > { %1709 = vmatprep.subr.bf16.mxu1 %v3062_v59 }
 0xb7e   : > { %1710 = vmatpush3.bf16.msra.mxu1 %v3077_v1 }
 0xb7f   : > { %1711 = vmatprep.subr.bf16.mxu1 %v3062_v59 }
 0xb82   : > { %1712 = vmatpush3.bf16.msra.mxu1 %v3080_v8 }
 0xb83   : > { %1713 = vmatprep.subr.bf16.mxu1 %v3062_v59 }
 0xb86   : > { %1714 = vmatpush3.bf16.msra.mxu1 %v3111_v17 }
 0xc3c   : > { %v1250_v49 = vpop.f32.mrb[16].mxu1  ;;  %v1291_v56 = vpop.f32.mrb[20].mxu0 }
 0xc3d   : > { %v1251_v2 = vadd.f32 %v1250_v49, %v3129_v57  ;;  %v1252_v61 = vpop.f32.mrb[17].mxu1  ;;  %v1293_v11 = vpop.f32.mrb[21].mxu0  ;;  %v1292_v17 = vadd.f32 %v1291_v56, %v2624_v0 }
 0xc3e   : > { %v1253_v4 = vadd.f32 %v1252_v61, %v2617_v51  ;;  %v1254_v62 = vpop.f32.mrb[18].mxu1  ;;  %v1295_v3 = vpop.f32.mrb[22].mxu0  ;;  %v1294_v8 = vadd.f32 %v1293_v11, %v3103_v38 }
 0xc3f   : > { %v1592_v7 = vmul.f32 -1.442695, %v1251_v2  ;;  %v1255_v1 = vpop.f32.mrb[19].mxu1  ;;  %v1296_v24 = vpop.f32.mrb[23].mxu0 }
 0xc40   : > { %v1593_v25 = vmul.f32 -1.442695, %v1253_v4  ;;  %v1594_v9 = vmul.f32 -1.442695, %v1294_v8 }
 0xc41   : > { %1951 = vpow2.f32 %v1592_v7 }
 0xc42   : > { %1953 = vpow2.f32 %v1593_v25 }
 0xc43   : > { %1955 = vpow2.f32 %v1594_v9 }
 0xc44   : > { %1957 = vtanh.f32 %v1292_v17 }
 0xc4b   : > { %v1952_v10 = vpop.eup %1951 }
 0xc4c   : > { %v1954_v32 = vpop.eup %1953  ;;  %v1301_v57 = vadd.f32 1.0, %v1952_v10 }
 0xc4d   : > { %v1307_v33 = vadd.f32 1.0, %v1954_v32  ;;  %v1956_v51 = vpop.eup %1955 }
 0xc4e   : > { %1959 = vrcp.f32 %v1301_v57  ;;  %v1958_v36 = vpop.eup %1957  ;;  %v1314_v44 = vadd.f32 1.0, %v1956_v51 }
 0xc4f   : > { %1961 = vrcp.f32 %v1307_v33 }
 0xc50   : > { %1963 = vrcp.f32 %v1314_v44 }
 0xc58   : > { %v1960_v37 = vpop.eup %1959 }
 0xc59   : > { %v1962_v40 = vpop.eup %1961  ;;  %v1318_v41 = vmul.f32 %v1960_v37, %v1958_v36 }
 0xc5a   : > { %v1317_v38 = vmul.f32 %v1962_v40, %v2834_v29  ;;  %v1964_v0 = vpop.eup %1963 }
 0xc5c   : > { %v1319_v45 = vadd.f32 %v1318_v41, %v1317_v38 }
 0xc5e   : > { %1965 = vtanh.f32 %v1319_v45  ;;  %1388 = vst [vmem:[#allocation3] sm:$0xff] %v1319_v45 }
 0xc68   : > { %v1966_v47 = vpop.eup %1965 }
 0xc69   : > { %v1321_v43 = vmul.f32 %v1966_v47, %v1964_v0 }
 0xc6b   : > { %v1322_v34 = vpack.c.bf16 %v1321_v43, %v1321_v43  ;;  %1387 = vst [vmem:[#allocation2] sm:$0xff] %v1321_v43 }
 0xc6d   : > { %1716 = vmatmul.mubr.bf16.vlgmr.msra.gmra.mrb[20].mxu1 %v1322_v34 }
 0xd40   : > { %v1357_v39 = vpop.f32.mrb[20].mxu1 }
 0xd41   : > { %v1358_v42 = vadd.f32 %v3110_v28, %v1357_v39  ;;  %v1717_v60 = vpop.f32.mrb[21].mxu1 }
 0xd42   : > { %v1360_v63 = vpop.f32.mrb[22].mxu1 }
 0xd43   : > { %1596 = vst [vmem:[%s2341_s27 + $0x18] sm:$0xff] %v1358_v42  ;;  %1363 = vmax.xlane.f32.xlu1 %v1358_v42  ;;  %v1718_v29 = vpop.f32.mrb[23].mxu1 }
 0xdd0   : > { %v1364_v14 = vpop.xlane.xlu1 %1363 }
 0xdd1   : > { %vm1365_vm14 = vcmp.eq.f32.partialorder %v1358_v42, %v1364_v14 }
 0xdd2   : > { %v1366_v26 = vsel %vm1365_vm14, %v3076_v6, 128 }
 0xdd3   : > { %v1368_v30 = vshra.s32 %v1366_v26, 16  ;;  %v1367_v48 = vand.u32 65535, %v1366_v26 }
 0xdd5   : > { %v1370_v5 = vcvt.s32.f32 %v1368_v30  ;;  %v1369_v27 = vcvt.s32.f32 %v1367_v48 }
 0xdd7   : > { %1371 = vmin.xlane.f32.xlu0 %v1370_v5 }
 0xe64   : > { %v1372_v53 = vpop.xlane.xlu0 %1371 }
 0xe65   : > { %vm1373_vm15 = vcmp.eq.f32.partialorder %v1370_v5, %v1372_v53 }
 0xe66   : > { %v1374_v28 = vsel %vm1373_vm15, %v1369_v27, inf }
 0xe67   : > { %1375 = vmin.xlane.f32.xlu1 %v1374_v28 }
 0xe68   : > { %2092 = shalt.err (!%p2089_p0)
}
 0xe69   : > { %s2093_s23 = scalar_lea.hbm %s2886_s13, 512  ;;  %s2097_s8 = scalar_lea.hbm %s2939_s4, 1024 }
 0xe6a   : > { %p2094_p2 = scmp.ne.s32.totalorder %s2886_s13, %s2093_s23  ;;  %p2098_p5 = scmp.lt.u32.totalorder %s2886_s13, %s2939_s4 }
 0xe6b   : > { %p2099_p13 = scmp.lt.u32.totalorder %s2097_s8, %s2093_s23  ;;  %p2101_p10 = scmp.lt.u32.totalorder %s2093_s23, %s2886_s13 }
 0xe6c   : > { %p2095_p1 = pnand %p2094_p2, %p3130_p11 }
 0xe6d   : > { %p2100_p9 = por %p2099_p13, %p2098_p5 }
 0xe6e   : > { %p2096_p6 = pneg %p2095_p1 }
 0xe6f   : > { %p2102_p3 = por %p2101_p10, %p2100_p9 }
 0xe71   : > { %p2103_p4 = pnand %p2102_p3, %p2096_p6 }
 0xe73   : > { %2106 = shalt.err (!%p2103_p4)
}
 0xe74   : > { %s2163_s30 = smov 128   ;;  %s2164_s7 = smov 8   ;;  %v1378_v50 = vcvt.f32.s32 %v1372_v53 }
 0xe75   : > { %1731 = dma.vmem_to_hbm [thread:$0]  (%p3130_p11), %s2888_s10, 512, %s2886_s13, %s2892_s20, %s2163_s30, %s2163_s30, %s2164_s7  }
 0xe76   : > { %v1379_v54 = vshll.u32 %v1378_v50, 16 }
 0xef4   : > { %v1376_v52 = vpop.xlane.xlu1 %1375 }
 0xef5   : > { %v1377_v55 = vcvt.f32.s32 %v1376_v52 }
 0xef7   : > { %v1380_v58 = vadd.s32 %v1379_v54, %v1377_v55 }
 0xef9   : > { %vm1381_vm0 = vcmp.eq.s32.totalorder %v3076_v6, %v1380_v58 }
 0xefa   : > { %v1595_v46 = vsel %vm1381_vm0, 1.0, %v3062_v59 }
 0xefb   : > { %v1384_v35 = vpack.c.bf16 %v1595_v46, %v1595_v46 }
 0xefd   : > { %1389 = vst [vmem:[#allocation4] sm:$0xf] %v1384_v35 }
 0xefe PF: > { %p1753_p7 = scmp.ge.s32.totalorder %s2149_s18, 2  ;;  %s1419_s9 = sand.u32 1, %s2137_s15  }
 0xeff   : > { %p3131_p8 = scmp.ne.s32.totalorder %s3020_s26, 0  ;;  %s1420_s25 = scalar_lea.sflag [#allocation7], %s1419_s9 }
 0xf01   : > { %p1744_p12 = pnand %p1753_p7, %p3131_p8 }
 0xf03   : > { %2132 = dma.done.wait (!%p1744_p12), %s1420_s25, 512  }
 0xf04   : > { %2134 = vsyncadd (!%p1744_p12), %s1420_s25, 4294966784  ;;  %p16_p11 = scmp.ge.s32.totalorder %s2215_s21, 4   ;;  %s3132_s15 = smov %s2141_s16 }
 0xf05   : > { %s3133_s16 = smov %s2145_s17  ;;  %s3134_s17 = smov %s2226_s24 }
 0xf06   : > { %s3135_s18 = smov %s2215_s21  ;;  %18 = sbr.rel (!%p16_p11) target bundleno = 5 (0x5), region = 88 }
 0xf0d   :  { %1425 = vsyncpa [#allocation6], 1 }
 0xf0e   :  { %1427 = vsyncpa [#allocation6 + $0x1], 1 }
 0xf0f   :  { %1428 = vsyncpa [#allocation9], 1 }
 0xf10   :  { %1429 = vsyncpa [#allocation7], 1 }
 0xf11   :  { %1431 = vsyncpa [#allocation7 + $0x1], 1 }

</bundles_post_ra>
